<compile_context>
chip_gen: v5e
topology: v5e:2x2
jax: 0.10.0
libtpu: 0.0.40
codegen_flags: <defaults>
</compile_context>

<pallas_src>
import functools

import jax
import jax.numpy as jnp
from jax.experimental import pallas as pl
from jax.experimental.pallas import tpu as pltpu  # noqa: F401  (kept for CompilerParams at scale)

OUT_PAD = 128  # lane-dense logits width (stored unmasked, sliced to out_segment in glue)


# ----------------------------------------------------------------------------
# Fused forward kernel (single invocation, everything VMEM-resident)
# ----------------------------------------------------------------------------
def ende_kernel(x_ref, g_ref, wd_ref, wb_ref, b_ref,
                wp_ref, bp_ref, w1l_ref, w1p_ref, b1_ref, w2_ref, b2_ref,
                o_ref, *, n_points, out_segment):
    f32 = jnp.float32
    x = x_ref[...]                                   # (BN, 2C) lane-stacked padded input
    bn, c2 = x.shape
    c = c2 // 2
    g = g_ref[...].astype(f32)                       # (K*BN, 2BN); bf16 in HBM (0/1 exact), upcast once
    k_nbr = g.shape[0] // bn
    n_layers = wd_ref.shape[0]

    wd, wb, bias = wd_ref[...], wb_ref[...], b_ref[...]

    # lane mask splitting the [local | global] halves of a (BN, 2C) feature tile
    col = jax.lax.broadcasted_iota(jnp.int32, (bn, c2), 1)
    is_local = col < c

    def layer(feat, l):
        # relu(x @ (Wt-Wb) + b + max_k(x_k @ Wb)), both branches lane-stacked,
        # gather AFTER the weight multiply (exact, since the gather is one-hot).
        base = jnp.dot(feat, wd[l], preferred_element_type=f32) + bias[l]      # (BN, 2C)
        nv = jnp.dot(feat, wb[l], preferred_element_type=f32)                  # (BN, 2C)
        nv_stack = jnp.concatenate(
            [jnp.where(is_local, nv, 0.0), jnp.where(is_local, 0.0, nv)], axis=0)  # (2BN, 2C)
        gathered = jnp.dot(g, nv_stack, preferred_element_type=f32)            # (K*BN, 2C) fused gather
        agg = gathered[0:bn]
        for kk in range(1, k_nbr):                                             # max over K (VPU)
            agg = jnp.maximum(agg, gathered[kk * bn:(kk + 1) * bn])
        return jnp.maximum(base + agg, 0.0)

    cur = layer(x, 0)                       # head (no residual)
    slices = [cur]
    for l in range(1, n_layers):            # residual dense blocks
        cur = layer(cur, l) + cur
        slices.append(cur)

    dense = jnp.concatenate(slices, axis=-1)                                   # (BN, 2C*S) lane-dense

    # ---- segmenter: MaxPool projection (only global rows of the wp slab are nonzero) ----
    proj = jnp.dot(dense, wp_ref[...], preferred_element_type=f32) + bp_ref[...]   # (BN, P)
    p = proj.shape[1]
    n_sk = bn // n_points
    pooled = jnp.max(proj.reshape(n_sk, n_points, p), axis=1)                  # (B, P) per-sketch max
    node_pool = jnp.broadcast_to(pooled[:, None, :], (n_sk, n_points, p)).reshape(bn, p)

    # segment MLP: local-slice part + pooled part (no concat materialized)
    h1 = jnp.dot(dense, w1l_ref[...], preferred_element_type=f32)
    h1 = h1 + jnp.dot(node_pool, w1p_ref[...], preferred_element_type=f32) + b1_ref[...]
    h1 = jnp.maximum(h1, 0.0)
    logits = jnp.dot(h1, w2_ref[...], preferred_element_type=f32) + b2_ref[...]    # (BN, OUT_PAD)

    # log-softmax over the valid columns; lane-dense unmasked store
    ocol = jax.lax.broadcasted_iota(jnp.int32, logits.shape, 1)
    valid = ocol < out_segment
    neg = f32(-1e30)
    lg = jnp.where(valid, logits, neg)
    m = jnp.max(lg, axis=-1, keepdims=True)
    z = lg - m
    lse = jnp.log(jnp.sum(jnp.where(valid, jnp.exp(z), 0.0), axis=-1, keepdims=True))
    o_ref[...] = z - lse


# ----------------------------------------------------------------------------
# JAX glue: one fused pallas_call for the whole eval forward
# ----------------------------------------------------------------------------
def ende_gnn_forward(x, local_nbr, global_nbr, batch_ids, params, num_sketches,
                     points_num, out_segment):
    bn, in_f = x.shape
    c = params["head_w_top"].shape[2]
    n_blocks = params["blk_w_top"].shape[1]
    n_layers = n_blocks + 1
    s = n_layers
    c2 = 2 * c
    k_nbr = local_nbr.shape[0]
    assert global_nbr.shape[0] == k_nbr, "branch fusion assumes local_k == global_k"
    assert bn == num_sketches * points_num
    assert bn % 8 == 0 and points_num % 8 == 0, "keep sublane tiles aligned"
    assert bool(jnp.all(batch_ids == jnp.arange(bn) // points_num)), \
        "reshape max-pool assumes contiguous equal-size sketches"

    # lane-stacked node features (both branches read the same raw input)
    x_pad = jnp.zeros((bn, c2), jnp.float32).at[:, :in_f].set(x)

    # fused one-hot gather matrix (bf16 storage; 0/1 exact): row k*BN+n selects
    # local_nbr[k,n] in cols [0,BN) and global_nbr[k,n] in cols [BN,2BN).
    cols = jnp.arange(bn)
    g_l = local_nbr.reshape(-1)[:, None] == cols[None, :]
    g_g = global_nbr.reshape(-1)[:, None] == cols[None, :]
    g_cat = jnp.concatenate([g_l, g_g], axis=1).astype(jnp.bfloat16)          # (K*BN, 2BN)

    # per-layer weight slabs: w_delta = w_top - w_bot folded here; block-diagonal over
    # the [local | global] lane halves (head rows zero-padded from in_f to 2C).
    def head_slab(w):      # w: (2, in_f, C)
        return (jnp.zeros((c2, c2), jnp.float32)
                .at[:in_f, :c].set(w[0]).at[:in_f, c:].set(w[1]))

    def block_slab(w, blk):  # w: (2, n_blocks, C, C)
        return (jnp.zeros((c2, c2), jnp.float32)
                .at[:c, :c].set(w[0, blk]).at[c:, c:].set(w[1, blk]))

    wd_all = [head_slab(params["head_w_top"] - params["head_w_bot"])]
    wb_all = [head_slab(params["head_w_bot"])]
    b_all = [jnp.concatenate([params["head_b"][0], params["head_b"][1]], axis=1)]
    blk_delta = params["blk_w_top"] - params["blk_w_bot"]
    for blk in range(n_blocks):
        wd_all.append(block_slab(blk_delta, blk))
        wb_all.append(block_slab(params["blk_w_bot"], blk))
        b_all.append(jnp.concatenate([params["blk_b"][0, blk], params["blk_b"][1, blk]], axis=1))
    wd_all = jnp.stack(wd_all)            # (L, 2C, 2C)
    wb_all = jnp.stack(wb_all)            # (L, 2C, 2C)
    b_all = jnp.stack(b_all)              # (L, 1, 2C)

    # segmenter slabs over the lane-dense dense-concat (BN, 2C*S):
    # wp acts on the global half of each slice, w1_local on the local half.
    p = params["wp"].shape[2]
    h = params["w1_l"].shape[2]
    wp_full = jnp.zeros((c2 * s, p), jnp.float32)
    w1l_full = jnp.zeros((c2 * s, h), jnp.float32)
    for si in range(s):
        wp_full = wp_full.at[si * c2 + c:(si + 1) * c2, :].set(params["wp"][si])
        w1l_full = w1l_full.at[si * c2:si * c2 + c, :].set(params["w1_l"][si])

    w2p = jnp.zeros((h, OUT_PAD), jnp.float32).at[:, :out_segment].set(params["w2"])
    b2p = jnp.zeros((1, OUT_PAD), jnp.float32).at[:, :out_segment].set(params["b2"])

    args = (x_pad, g_cat, wd_all, wb_all, b_all,
            wp_full, params["bp"], w1l_full, params["w1_p"], params["b1"], w2p, b2p)

    def full_spec(a):
        return pl.BlockSpec(a.shape, lambda i, _nd=a.ndim: (0,) * _nd)

    out = pl.pallas_call(
        functools.partial(ende_kernel, n_points=points_num, out_segment=out_segment),
        out_shape=jax.ShapeDtypeStruct((bn, OUT_PAD), jnp.float32),
        grid=(1,),
        in_specs=[full_spec(a) for a in args],
        out_specs=pl.BlockSpec((bn, OUT_PAD), lambda i: (0, 0)),
    )(*args)
    return out[:, :out_segment]


# ----------------------------------------------------------------------------
# Pure-JAX reference (original concat formulation) used to validate the fused
# kernel's algebraic restructuring and the torch-style weight-row ordering.
# Torch mapping: Linear W (out, 2*in) -> w_top = W[:, :in].T, w_bot = W[:, in:].T;
#                wp (P, C*S) -> wp.T.reshape(C, S, P).transpose(1, 0, 2) == here "wp".
# ----------------------------------------------------------------------------
def reference_forward(x, local_nbr, global_nbr, batch_ids, params, num_sketches):
    def edgeconv_ref(feat, nbr, w_top, w_bot, b):
        W = jnp.concatenate([w_top, w_bot], axis=0)                   # (2*Cin, C)
        xn = feat[nbr]                                                # (K, BN, Cin)
        xb = jnp.broadcast_to(feat[None], xn.shape)
        e = jnp.concatenate([xb, xn - xb], axis=-1)                   # (K, BN, 2*Cin)
        hh = jnp.maximum(jnp.einsum("kne,ec->knc", e, W) + b, 0.0)
        return jnp.max(hh, axis=0)

    def branch(feat, nbr, br):
        hh = edgeconv_ref(feat, nbr, params["head_w_top"][br], params["head_w_bot"][br],
                          params["head_b"][br])
        slices, cur = [hh], hh
        for blk in range(params["blk_w_top"].shape[1]):
            cur = edgeconv_ref(cur, nbr, params["blk_w_top"][br, blk],
                               params["blk_w_bot"][br, blk], params["blk_b"][br, blk]) + cur
            slices.append(cur)
        # torch .view(BN, -1) on (BN, C, S): channel-major, slice-minor
        return jnp.stack(slices, axis=-1).reshape(feat.shape[0], -1)

    x_l = branch(x, local_nbr, 0)
    x_g = branch(x, global_nbr, 1)
    S, C = params["wp"].shape[0], params["wp"].shape[1]
    wp_full = jnp.transpose(params["wp"], (1, 0, 2)).reshape(C * S, -1)
    w1l_full = jnp.transpose(params["w1_l"], (1, 0, 2)).reshape(C * S, -1)
    w1_full = jnp.concatenate([w1l_full, params["w1_p"]], axis=0)

    proj = x_g @ wp_full + params["bp"]
    onehot = (batch_ids[:, None] == jnp.arange(num_sketches)[None, :]).astype(jnp.float32)
    pooled = jnp.max(jnp.where(onehot.T[:, :, None] > 0.5, proj[None], -1e30), axis=1)  # (B, P)
    node_pool = pooled[batch_ids]
    h1 = jnp.maximum(jnp.concatenate([x_l, node_pool], axis=-1) @ w1_full + params["b1"], 0.0)
    logits = h1 @ params["w2"] + params["b2"]
    return jax.nn.log_softmax(logits, axis=1)


# ----------------------------------------------------------------------------
# Deterministic setup & demo
# ----------------------------------------------------------------------------
if __name__ == "__main__":
    # small opt-like config
    B = 2                  # sketches in batch
    POINTS = 16            # opt.points_num
    IN_F = 2               # opt.in_feature
    C = 16                 # opt.channels
    N_BLOCKS = 3           # opt.n_blocks
    K = 4                  # opt.local_k == opt.global_k
    POOL_CH = 32           # opt.pool_channels
    MLP_SEG = 64           # opt.mlp_segment = [64]
    OUT_SEG = 4            # opt.out_segment
    BN = B * POINTS
    S = N_BLOCKS + 1       # dense-concat slices per branch

    key = jax.random.PRNGKey(0)
    keys = jax.random.split(key, 16)

    def w_init(k, shape, scale=0.1):
        return (scale * jax.random.normal(k, shape)).astype(jnp.float32)

    params = {
        "head_w_top": w_init(keys[0], (2, IN_F, C)),
        "head_w_bot": w_init(keys[1], (2, IN_F, C)),
        "head_b":     w_init(keys[2], (2, 1, C)),
        "blk_w_top":  w_init(keys[3], (2, N_BLOCKS, C, C)),
        "blk_w_bot":  w_init(keys[4], (2, N_BLOCKS, C, C)),
        "blk_b":      w_init(keys[5], (2, N_BLOCKS, 1, C)),
        "wp":         w_init(keys[6], (S, C, POOL_CH)),
        "bp":         w_init(keys[7], (1, POOL_CH)),
        "w1_l":       w_init(keys[8], (S, C, MLP_SEG)),
        "w1_p":       w_init(keys[9], (POOL_CH, MLP_SEG)),
        "b1":         w_init(keys[10], (1, MLP_SEG)),
        "w2":         w_init(keys[11], (MLP_SEG, OUT_SEG)),
        "b2":         w_init(keys[12], (1, OUT_SEG)),
    }

    # node features: (BN, IN_F) sketch-point coordinates
    x = jax.random.normal(keys[13], (BN, IN_F), dtype=jnp.float32)

    # deterministic static graphs: sequence-offset neighbors within each sketch
    # (stand-in for the edge_index / KNN graphs of GraphConv / DynConv)
    p_idx = jnp.arange(BN) % POINTS
    base = (jnp.arange(BN) // POINTS) * POINTS

    def nbr_table(offsets):
        return jnp.stack([base + jnp.clip(p_idx + off, 0, POINTS - 1) for off in offsets],
                         axis=0).astype(jnp.int32)                      # (K, BN)

    local_nbr = nbr_table((-2, -1, 1, 2))     # local (dilation 1-ish)
    global_nbr = nbr_table((-8, -4, 4, 8))    # global (dilated)
    batch_ids = (jnp.arange(BN) // POINTS).astype(jnp.int32)

    out = ende_gnn_forward(x, local_nbr, global_nbr, batch_ids, params, B, POINTS, OUT_SEG)
    out = jax.block_until_ready(out)

    assert out.shape == (BN, OUT_SEG)
    assert bool(jnp.all(jnp.isfinite(out)))
    # rows of log-softmax must sum to ~1 in prob space
    assert bool(jnp.allclose(jnp.sum(jnp.exp(out), axis=1), 1.0, atol=1e-4))
    # fused / restructured kernel must match the straightforward concat formulation
    ref = reference_forward(x, local_nbr, global_nbr, batch_ids, params, B)
    assert bool(jnp.allclose(out, ref, atol=1e-4, rtol=1e-4))
    print("KERNEL_OK")
</pallas_src>

<mosaic_0001>
module attributes {stable_mosaic.version = 11 : i64} {
  func.func @ende_kernel(%arg0: i32, %arg1: memref<32x32xf32, #tpu.memory_space<vmem>>, %arg2: memref<128x64xbf16, #tpu.memory_space<vmem>>, %arg3: memref<4x32x32xf32, #tpu.memory_space<vmem>>, %arg4: memref<4x32x32xf32, #tpu.memory_space<vmem>>, %arg5: memref<4x1x32xf32, #tpu.memory_space<vmem>>, %arg6: memref<128x32xf32, #tpu.memory_space<vmem>>, %arg7: memref<1x32xf32, #tpu.memory_space<vmem>>, %arg8: memref<128x64xf32, #tpu.memory_space<vmem>>, %arg9: memref<32x64xf32, #tpu.memory_space<vmem>>, %arg10: memref<1x64xf32, #tpu.memory_space<vmem>>, %arg11: memref<64x128xf32, #tpu.memory_space<vmem>>, %arg12: memref<1x128xf32, #tpu.memory_space<vmem>>, %arg13: memref<32x128xf32, #tpu.memory_space<vmem>>) attributes {dimension_semantics = [#tpu.dimension_semantics<arbitrary>], iteration_bounds = array<i64: 1>, scalar_prefetch = 0 : i64, scratch_operands = 0 : i64, tpu.core_type = #tpu.core_type<tc>, window_params = [{pipeline_mode = #tpu.pipeline_mode<synchronous>, transform_indices = @transform_0, window_bounds = array<i64: 32, 32>}, {pipeline_mode = #tpu.pipeline_mode<synchronous>, transform_indices = @transform_1, window_bounds = array<i64: 128, 64>}, {pipeline_mode = #tpu.pipeline_mode<synchronous>, transform_indices = @transform_2, window_bounds = array<i64: 4, 32, 32>}, {pipeline_mode = #tpu.pipeline_mode<synchronous>, transform_indices = @transform_3, window_bounds = array<i64: 4, 32, 32>}, {pipeline_mode = #tpu.pipeline_mode<synchronous>, transform_indices = @transform_4, window_bounds = array<i64: 4, 1, 32>}, {pipeline_mode = #tpu.pipeline_mode<synchronous>, transform_indices = @transform_5, window_bounds = array<i64: 128, 32>}, {pipeline_mode = #tpu.pipeline_mode<synchronous>, transform_indices = @transform_6, window_bounds = array<i64: 1, 32>}, {pipeline_mode = #tpu.pipeline_mode<synchronous>, transform_indices = @transform_7, window_bounds = array<i64: 128, 64>}, {pipeline_mode = #tpu.pipeline_mode<synchronous>, transform_indices = @transform_8, window_bounds = array<i64: 32, 64>}, {pipeline_mode = #tpu.pipeline_mode<synchronous>, transform_indices = @transform_9, window_bounds = array<i64: 1, 64>}, {pipeline_mode = #tpu.pipeline_mode<synchronous>, transform_indices = @transform_10, window_bounds = array<i64: 64, 128>}, {pipeline_mode = #tpu.pipeline_mode<synchronous>, transform_indices = @transform_11, window_bounds = array<i64: 1, 128>}, {pipeline_mode = #tpu.pipeline_mode<synchronous>, transform_indices = @transform_12, window_bounds = array<i64: 32, 128>}]} {
    %c0 = arith.constant 0 : index
    %c0_0 = arith.constant 0 : index
    %0 = vector.load %arg1[%c0, %c0_0] : memref<32x32xf32, #tpu.memory_space<vmem>>, vector<32x32xf32>
    %c0_1 = arith.constant 0 : index
    %c0_2 = arith.constant 0 : index
    %1 = vector.load %arg2[%c0_1, %c0_2] : memref<128x64xbf16, #tpu.memory_space<vmem>>, vector<128x64xbf16>
    %2 = arith.extf %1 : vector<128x64xbf16> to vector<128x64xf32>
    %c0_3 = arith.constant 0 : index
    %c0_4 = arith.constant 0 : index
    %c0_5 = arith.constant 0 : index
    %3 = vector.load %arg3[%c0_3, %c0_4, %c0_5] : memref<4x32x32xf32, #tpu.memory_space<vmem>>, vector<4x32x32xf32>
    %c0_6 = arith.constant 0 : index
    %c0_7 = arith.constant 0 : index
    %c0_8 = arith.constant 0 : index
    %4 = vector.load %arg4[%c0_6, %c0_7, %c0_8] : memref<4x32x32xf32, #tpu.memory_space<vmem>>, vector<4x32x32xf32>
    %c0_9 = arith.constant 0 : index
    %c0_10 = arith.constant 0 : index
    %c0_11 = arith.constant 0 : index
    %5 = vector.load %arg5[%c0_9, %c0_10, %c0_11] : memref<4x1x32xf32, #tpu.memory_space<vmem>>, vector<4x1x32xf32>
    %6 = tpu.iota {dimensions = array<i32: 1>} : vector<32x32xi32>
    %c16_i32 = arith.constant 16 : i32
    %7 = vector.broadcast %c16_i32 : i32 to vector<32x32xi32>
    %8 = arith.cmpi slt, %6, %7 : vector<32x32xi32>
    %9 = vector.extract_strided_slice %3 {offsets = [0, 0, 0], sizes = [1, 32, 32], strides = [1, 1, 1]} : vector<4x32x32xf32> to vector<1x32x32xf32>
    %10 = vector.shape_cast %9 : vector<1x32x32xf32> to vector<32x32xf32>
    %cst = arith.constant dense<0.000000e+00> : vector<32x32xf32>
    %11 = tpu.matmul %0, %10, %cst {dimension_numbers = #tpu.dot_dimension_numbers<[1], [0], [0], [1], [0, 0, 1, 1], [], []>} : vector<32x32xf32>, vector<32x32xf32>, vector<32x32xf32> -> vector<32x32xf32>
    %12 = vector.extract_strided_slice %5 {offsets = [0, 0, 0], sizes = [1, 1, 32], strides = [1, 1, 1]} : vector<4x1x32xf32> to vector<1x1x32xf32>
    %13 = vector.shape_cast %12 : vector<1x1x32xf32> to vector<1x32xf32>
    %14 = vector.broadcast %13 : vector<1x32xf32> to vector<32x32xf32>
    %15 = arith.addf %11, %14 : vector<32x32xf32>
    %16 = vector.extract_strided_slice %4 {offsets = [0, 0, 0], sizes = [1, 32, 32], strides = [1, 1, 1]} : vector<4x32x32xf32> to vector<1x32x32xf32>
    %17 = vector.shape_cast %16 : vector<1x32x32xf32> to vector<32x32xf32>
    %cst_12 = arith.constant dense<0.000000e+00> : vector<32x32xf32>
    %18 = tpu.matmul %0, %17, %cst_12 {dimension_numbers = #tpu.dot_dimension_numbers<[1], [0], [0], [1], [0, 0, 1, 1], [], []>} : vector<32x32xf32>, vector<32x32xf32>, vector<32x32xf32> -> vector<32x32xf32>
    %cst_13 = arith.constant 0.000000e+00 : f32
    %19 = vector.broadcast %cst_13 : f32 to vector<32x32xf32>
    %20 = arith.select %8, %18, %19 : vector<32x32xi1>, vector<32x32xf32>
    %cst_14 = arith.constant 0.000000e+00 : f32
    %21 = vector.broadcast %cst_14 : f32 to vector<32x32xf32>
    %22 = arith.select %8, %21, %18 : vector<32x32xi1>, vector<32x32xf32>
    %23 = tpu.concatenate %20, %22 in 0 : vector<32x32xf32>, vector<32x32xf32> -> vector<64x32xf32>
    %cst_15 = arith.constant dense<0.000000e+00> : vector<128x32xf32>
    %24 = tpu.matmul %2, %23, %cst_15 {dimension_numbers = #tpu.dot_dimension_numbers<[1], [0], [0], [1], [0, 0, 1, 1], [], []>} : vector<128x64xf32>, vector<64x32xf32>, vector<128x32xf32> -> vector<128x32xf32>
    %25 = vector.extract_strided_slice %24 {offsets = [0, 0], sizes = [32, 32], strides = [1, 1]} : vector<128x32xf32> to vector<32x32xf32>
    %26 = vector.extract_strided_slice %24 {offsets = [32, 0], sizes = [32, 32], strides = [1, 1]} : vector<128x32xf32> to vector<32x32xf32>
    %27 = arith.maximumf %25, %26 : vector<32x32xf32>
    %28 = vector.extract_strided_slice %24 {offsets = [64, 0], sizes = [32, 32], strides = [1, 1]} : vector<128x32xf32> to vector<32x32xf32>
    %29 = arith.maximumf %27, %28 : vector<32x32xf32>
    %30 = vector.extract_strided_slice %24 {offsets = [96, 0], sizes = [32, 32], strides = [1, 1]} : vector<128x32xf32> to vector<32x32xf32>
    %31 = arith.maximumf %29, %30 : vector<32x32xf32>
    %32 = arith.addf %15, %31 : vector<32x32xf32>
    %cst_16 = arith.constant 0.000000e+00 : f32
    %33 = vector.broadcast %cst_16 : f32 to vector<32x32xf32>
    %34 = arith.maximumf %32, %33 : vector<32x32xf32>
    %35 = vector.extract_strided_slice %3 {offsets = [1, 0, 0], sizes = [1, 32, 32], strides = [1, 1, 1]} : vector<4x32x32xf32> to vector<1x32x32xf32>
    %36 = vector.shape_cast %35 : vector<1x32x32xf32> to vector<32x32xf32>
    %cst_17 = arith.constant dense<0.000000e+00> : vector<32x32xf32>
    %37 = tpu.matmul %34, %36, %cst_17 {dimension_numbers = #tpu.dot_dimension_numbers<[1], [0], [0], [1], [0, 0, 1, 1], [], []>} : vector<32x32xf32>, vector<32x32xf32>, vector<32x32xf32> -> vector<32x32xf32>
    %38 = vector.extract_strided_slice %5 {offsets = [1, 0, 0], sizes = [1, 1, 32], strides = [1, 1, 1]} : vector<4x1x32xf32> to vector<1x1x32xf32>
    %39 = vector.shape_cast %38 : vector<1x1x32xf32> to vector<1x32xf32>
    %40 = vector.broadcast %39 : vector<1x32xf32> to vector<32x32xf32>
    %41 = arith.addf %37, %40 : vector<32x32xf32>
    %42 = vector.extract_strided_slice %4 {offsets = [1, 0, 0], sizes = [1, 32, 32], strides = [1, 1, 1]} : vector<4x32x32xf32> to vector<1x32x32xf32>
    %43 = vector.shape_cast %42 : vector<1x32x32xf32> to vector<32x32xf32>
    %cst_18 = arith.constant dense<0.000000e+00> : vector<32x32xf32>
    %44 = tpu.matmul %34, %43, %cst_18 {dimension_numbers = #tpu.dot_dimension_numbers<[1], [0], [0], [1], [0, 0, 1, 1], [], []>} : vector<32x32xf32>, vector<32x32xf32>, vector<32x32xf32> -> vector<32x32xf32>
    %cst_19 = arith.constant 0.000000e+00 : f32
    %45 = vector.broadcast %cst_19 : f32 to vector<32x32xf32>
    %46 = arith.select %8, %44, %45 : vector<32x32xi1>, vector<32x32xf32>
    %cst_20 = arith.constant 0.000000e+00 : f32
    %47 = vector.broadcast %cst_20 : f32 to vector<32x32xf32>
    %48 = arith.select %8, %47, %44 : vector<32x32xi1>, vector<32x32xf32>
    %49 = tpu.concatenate %46, %48 in 0 : vector<32x32xf32>, vector<32x32xf32> -> vector<64x32xf32>
    %cst_21 = arith.constant dense<0.000000e+00> : vector<128x32xf32>
    %50 = tpu.matmul %2, %49, %cst_21 {dimension_numbers = #tpu.dot_dimension_numbers<[1], [0], [0], [1], [0, 0, 1, 1], [], []>} : vector<128x64xf32>, vector<64x32xf32>, vector<128x32xf32> -> vector<128x32xf32>
    %51 = vector.extract_strided_slice %50 {offsets = [0, 0], sizes = [32, 32], strides = [1, 1]} : vector<128x32xf32> to vector<32x32xf32>
    %52 = vector.extract_strided_slice %50 {offsets = [32, 0], sizes = [32, 32], strides = [1, 1]} : vector<128x32xf32> to vector<32x32xf32>
    %53 = arith.maximumf %51, %52 : vector<32x32xf32>
    %54 = vector.extract_strided_slice %50 {offsets = [64, 0], sizes = [32, 32], strides = [1, 1]} : vector<128x32xf32> to vector<32x32xf32>
    %55 = arith.maximumf %53, %54 : vector<32x32xf32>
    %56 = vector.extract_strided_slice %50 {offsets = [96, 0], sizes = [32, 32], strides = [1, 1]} : vector<128x32xf32> to vector<32x32xf32>
    %57 = arith.maximumf %55, %56 : vector<32x32xf32>
    %58 = arith.addf %41, %57 : vector<32x32xf32>
    %cst_22 = arith.constant 0.000000e+00 : f32
    %59 = vector.broadcast %cst_22 : f32 to vector<32x32xf32>
    %60 = arith.maximumf %58, %59 : vector<32x32xf32>
    %61 = arith.addf %60, %34 : vector<32x32xf32>
    %62 = vector.extract_strided_slice %3 {offsets = [2, 0, 0], sizes = [1, 32, 32], strides = [1, 1, 1]} : vector<4x32x32xf32> to vector<1x32x32xf32>
    %63 = vector.shape_cast %62 : vector<1x32x32xf32> to vector<32x32xf32>
    %cst_23 = arith.constant dense<0.000000e+00> : vector<32x32xf32>
    %64 = tpu.matmul %61, %63, %cst_23 {dimension_numbers = #tpu.dot_dimension_numbers<[1], [0], [0], [1], [0, 0, 1, 1], [], []>} : vector<32x32xf32>, vector<32x32xf32>, vector<32x32xf32> -> vector<32x32xf32>
    %65 = vector.extract_strided_slice %5 {offsets = [2, 0, 0], sizes = [1, 1, 32], strides = [1, 1, 1]} : vector<4x1x32xf32> to vector<1x1x32xf32>
    %66 = vector.shape_cast %65 : vector<1x1x32xf32> to vector<1x32xf32>
    %67 = vector.broadcast %66 : vector<1x32xf32> to vector<32x32xf32>
    %68 = arith.addf %64, %67 : vector<32x32xf32>
    %69 = vector.extract_strided_slice %4 {offsets = [2, 0, 0], sizes = [1, 32, 32], strides = [1, 1, 1]} : vector<4x32x32xf32> to vector<1x32x32xf32>
    %70 = vector.shape_cast %69 : vector<1x32x32xf32> to vector<32x32xf32>
    %cst_24 = arith.constant dense<0.000000e+00> : vector<32x32xf32>
    %71 = tpu.matmul %61, %70, %cst_24 {dimension_numbers = #tpu.dot_dimension_numbers<[1], [0], [0], [1], [0, 0, 1, 1], [], []>} : vector<32x32xf32>, vector<32x32xf32>, vector<32x32xf32> -> vector<32x32xf32>
    %cst_25 = arith.constant 0.000000e+00 : f32
    %72 = vector.broadcast %cst_25 : f32 to vector<32x32xf32>
    %73 = arith.select %8, %71, %72 : vector<32x32xi1>, vector<32x32xf32>
    %cst_26 = arith.constant 0.000000e+00 : f32
    %74 = vector.broadcast %cst_26 : f32 to vector<32x32xf32>
    %75 = arith.select %8, %74, %71 : vector<32x32xi1>, vector<32x32xf32>
    %76 = tpu.concatenate %73, %75 in 0 : vector<32x32xf32>, vector<32x32xf32> -> vector<64x32xf32>
    %cst_27 = arith.constant dense<0.000000e+00> : vector<128x32xf32>
    %77 = tpu.matmul %2, %76, %cst_27 {dimension_numbers = #tpu.dot_dimension_numbers<[1], [0], [0], [1], [0, 0, 1, 1], [], []>} : vector<128x64xf32>, vector<64x32xf32>, vector<128x32xf32> -> vector<128x32xf32>
    %78 = vector.extract_strided_slice %77 {offsets = [0, 0], sizes = [32, 32], strides = [1, 1]} : vector<128x32xf32> to vector<32x32xf32>
    %79 = vector.extract_strided_slice %77 {offsets = [32, 0], sizes = [32, 32], strides = [1, 1]} : vector<128x32xf32> to vector<32x32xf32>
    %80 = arith.maximumf %78, %79 : vector<32x32xf32>
    %81 = vector.extract_strided_slice %77 {offsets = [64, 0], sizes = [32, 32], strides = [1, 1]} : vector<128x32xf32> to vector<32x32xf32>
    %82 = arith.maximumf %80, %81 : vector<32x32xf32>
    %83 = vector.extract_strided_slice %77 {offsets = [96, 0], sizes = [32, 32], strides = [1, 1]} : vector<128x32xf32> to vector<32x32xf32>
    %84 = arith.maximumf %82, %83 : vector<32x32xf32>
    %85 = arith.addf %68, %84 : vector<32x32xf32>
    %cst_28 = arith.constant 0.000000e+00 : f32
    %86 = vector.broadcast %cst_28 : f32 to vector<32x32xf32>
    %87 = arith.maximumf %85, %86 : vector<32x32xf32>
    %88 = arith.addf %87, %61 : vector<32x32xf32>
    %89 = vector.extract_strided_slice %3 {offsets = [3, 0, 0], sizes = [1, 32, 32], strides = [1, 1, 1]} : vector<4x32x32xf32> to vector<1x32x32xf32>
    %90 = vector.shape_cast %89 : vector<1x32x32xf32> to vector<32x32xf32>
    %cst_29 = arith.constant dense<0.000000e+00> : vector<32x32xf32>
    %91 = tpu.matmul %88, %90, %cst_29 {dimension_numbers = #tpu.dot_dimension_numbers<[1], [0], [0], [1], [0, 0, 1, 1], [], []>} : vector<32x32xf32>, vector<32x32xf32>, vector<32x32xf32> -> vector<32x32xf32>
    %92 = vector.extract_strided_slice %5 {offsets = [3, 0, 0], sizes = [1, 1, 32], strides = [1, 1, 1]} : vector<4x1x32xf32> to vector<1x1x32xf32>
    %93 = vector.shape_cast %92 : vector<1x1x32xf32> to vector<1x32xf32>
    %94 = vector.broadcast %93 : vector<1x32xf32> to vector<32x32xf32>
    %95 = arith.addf %91, %94 : vector<32x32xf32>
    %96 = vector.extract_strided_slice %4 {offsets = [3, 0, 0], sizes = [1, 32, 32], strides = [1, 1, 1]} : vector<4x32x32xf32> to vector<1x32x32xf32>
    %97 = vector.shape_cast %96 : vector<1x32x32xf32> to vector<32x32xf32>
    %cst_30 = arith.constant dense<0.000000e+00> : vector<32x32xf32>
    %98 = tpu.matmul %88, %97, %cst_30 {dimension_numbers = #tpu.dot_dimension_numbers<[1], [0], [0], [1], [0, 0, 1, 1], [], []>} : vector<32x32xf32>, vector<32x32xf32>, vector<32x32xf32> -> vector<32x32xf32>
    %cst_31 = arith.constant 0.000000e+00 : f32
    %99 = vector.broadcast %cst_31 : f32 to vector<32x32xf32>
    %100 = arith.select %8, %98, %99 : vector<32x32xi1>, vector<32x32xf32>
    %cst_32 = arith.constant 0.000000e+00 : f32
    %101 = vector.broadcast %cst_32 : f32 to vector<32x32xf32>
    %102 = arith.select %8, %101, %98 : vector<32x32xi1>, vector<32x32xf32>
    %103 = tpu.concatenate %100, %102 in 0 : vector<32x32xf32>, vector<32x32xf32> -> vector<64x32xf32>
    %cst_33 = arith.constant dense<0.000000e+00> : vector<128x32xf32>
    %104 = tpu.matmul %2, %103, %cst_33 {dimension_numbers = #tpu.dot_dimension_numbers<[1], [0], [0], [1], [0, 0, 1, 1], [], []>} : vector<128x64xf32>, vector<64x32xf32>, vector<128x32xf32> -> vector<128x32xf32>
    %105 = vector.extract_strided_slice %104 {offsets = [0, 0], sizes = [32, 32], strides = [1, 1]} : vector<128x32xf32> to vector<32x32xf32>
    %106 = vector.extract_strided_slice %104 {offsets = [32, 0], sizes = [32, 32], strides = [1, 1]} : vector<128x32xf32> to vector<32x32xf32>
    %107 = arith.maximumf %105, %106 : vector<32x32xf32>
    %108 = vector.extract_strided_slice %104 {offsets = [64, 0], sizes = [32, 32], strides = [1, 1]} : vector<128x32xf32> to vector<32x32xf32>
    %109 = arith.maximumf %107, %108 : vector<32x32xf32>
    %110 = vector.extract_strided_slice %104 {offsets = [96, 0], sizes = [32, 32], strides = [1, 1]} : vector<128x32xf32> to vector<32x32xf32>
    %111 = arith.maximumf %109, %110 : vector<32x32xf32>
    %112 = arith.addf %95, %111 : vector<32x32xf32>
    %cst_34 = arith.constant 0.000000e+00 : f32
    %113 = vector.broadcast %cst_34 : f32 to vector<32x32xf32>
    %114 = arith.maximumf %112, %113 : vector<32x32xf32>
    %115 = arith.addf %114, %88 : vector<32x32xf32>
    %116 = tpu.concatenate %34, %61, %88, %115 in 1 : vector<32x32xf32>, vector<32x32xf32>, vector<32x32xf32>, vector<32x32xf32> -> vector<32x128xf32>
    %c0_35 = arith.constant 0 : index
    %c0_36 = arith.constant 0 : index
    %117 = vector.load %arg6[%c0_35, %c0_36] : memref<128x32xf32, #tpu.memory_space<vmem>>, vector<128x32xf32>
    %cst_37 = arith.constant dense<0.000000e+00> : vector<32x32xf32>
    %118 = tpu.matmul %116, %117, %cst_37 {dimension_numbers = #tpu.dot_dimension_numbers<[1], [0], [0], [1], [0, 0, 1, 1], [], []>} : vector<32x128xf32>, vector<128x32xf32>, vector<32x32xf32> -> vector<32x32xf32>
    %c0_38 = arith.constant 0 : index
    %c0_39 = arith.constant 0 : index
    %119 = vector.load %arg7[%c0_38, %c0_39] : memref<1x32xf32, #tpu.memory_space<vmem>>, vector<1x32xf32>
    %120 = vector.broadcast %119 : vector<1x32xf32> to vector<32x32xf32>
    %121 = arith.addf %118, %120 : vector<32x32xf32>
    %122 = vector.shape_cast %121 : vector<32x32xf32> to vector<2x16x32xf32>
    %cst_40 = arith.constant dense<0xFF800000> : vector<2x32xf32>
    %123 = vector.multi_reduction <maximumf>, %122, %cst_40 [1] : vector<2x16x32xf32> to vector<2x32xf32>
    %124 = vector.shape_cast %123 : vector<2x32xf32> to vector<2x1x32xf32>
    %125 = vector.shape_cast %124 : vector<2x1x32xf32> to vector<2x1x32xf32>
    %126 = vector.broadcast %125 : vector<2x1x32xf32> to vector<2x16x32xf32>
    %127 = vector.shape_cast %126 : vector<2x16x32xf32> to vector<32x32xf32>
    %c0_41 = arith.constant 0 : index
    %c0_42 = arith.constant 0 : index
    %128 = vector.load %arg8[%c0_41, %c0_42] : memref<128x64xf32, #tpu.memory_space<vmem>>, vector<128x64xf32>
    %cst_43 = arith.constant dense<0.000000e+00> : vector<32x64xf32>
    %129 = tpu.matmul %116, %128, %cst_43 {dimension_numbers = #tpu.dot_dimension_numbers<[1], [0], [0], [1], [0, 0, 1, 1], [], []>} : vector<32x128xf32>, vector<128x64xf32>, vector<32x64xf32> -> vector<32x64xf32>
    %c0_44 = arith.constant 0 : index
    %c0_45 = arith.constant 0 : index
    %130 = vector.load %arg9[%c0_44, %c0_45] : memref<32x64xf32, #tpu.memory_space<vmem>>, vector<32x64xf32>
    %cst_46 = arith.constant dense<0.000000e+00> : vector<32x64xf32>
    %131 = tpu.matmul %127, %130, %cst_46 {dimension_numbers = #tpu.dot_dimension_numbers<[1], [0], [0], [1], [0, 0, 1, 1], [], []>} : vector<32x32xf32>, vector<32x64xf32>, vector<32x64xf32> -> vector<32x64xf32>
    %132 = arith.addf %129, %131 : vector<32x64xf32>
    %c0_47 = arith.constant 0 : index
    %c0_48 = arith.constant 0 : index
    %133 = vector.load %arg10[%c0_47, %c0_48] : memref<1x64xf32, #tpu.memory_space<vmem>>, vector<1x64xf32>
    %134 = vector.broadcast %133 : vector<1x64xf32> to vector<32x64xf32>
    %135 = arith.addf %132, %134 : vector<32x64xf32>
    %cst_49 = arith.constant 0.000000e+00 : f32
    %136 = vector.broadcast %cst_49 : f32 to vector<32x64xf32>
    %137 = arith.maximumf %135, %136 : vector<32x64xf32>
    %c0_50 = arith.constant 0 : index
    %c0_51 = arith.constant 0 : index
    %138 = vector.load %arg11[%c0_50, %c0_51] : memref<64x128xf32, #tpu.memory_space<vmem>>, vector<64x128xf32>
    %cst_52 = arith.constant dense<0.000000e+00> : vector<32x128xf32>
    %139 = tpu.matmul %137, %138, %cst_52 {dimension_numbers = #tpu.dot_dimension_numbers<[1], [0], [0], [1], [0, 0, 1, 1], [], []>} : vector<32x64xf32>, vector<64x128xf32>, vector<32x128xf32> -> vector<32x128xf32>
    %c0_53 = arith.constant 0 : index
    %c0_54 = arith.constant 0 : index
    %140 = vector.load %arg12[%c0_53, %c0_54] : memref<1x128xf32, #tpu.memory_space<vmem>>, vector<1x128xf32>
    %141 = vector.broadcast %140 : vector<1x128xf32> to vector<32x128xf32>
    %142 = arith.addf %139, %141 : vector<32x128xf32>
    %143 = tpu.iota {dimensions = array<i32: 1>} : vector<32x128xi32>
    %c4_i32 = arith.constant 4 : i32
    %144 = vector.broadcast %c4_i32 : i32 to vector<32x128xi32>
    %145 = arith.cmpi slt, %143, %144 : vector<32x128xi32>
    %cst_55 = arith.constant -1.000000e+30 : f32
    %146 = vector.broadcast %cst_55 : f32 to vector<32x128xf32>
    %147 = arith.select %145, %142, %146 : vector<32x128xi1>, vector<32x128xf32>
    %cst_56 = arith.constant dense<0xFF800000> : vector<32xf32>
    %148 = vector.multi_reduction <maximumf>, %147, %cst_56 [1] : vector<32x128xf32> to vector<32xf32>
    %149 = vector.shape_cast %148 : vector<32xf32> to vector<32x1xf32>
    %150 = vector.broadcast %149 : vector<32x1xf32> to vector<32x128xf32>
    %151 = arith.subf %147, %150 : vector<32x128xf32>
    %152 = math.exp %151 : vector<32x128xf32>
    %cst_57 = arith.constant 0.000000e+00 : f32
    %153 = vector.broadcast %cst_57 : f32 to vector<32x128xf32>
    %154 = arith.select %145, %152, %153 : vector<32x128xi1>, vector<32x128xf32>
    %cst_58 = arith.constant dense<0.000000e+00> : vector<32xf32>
    %155 = vector.multi_reduction <add>, %154, %cst_58 [1] : vector<32x128xf32> to vector<32xf32>
    %156 = vector.shape_cast %155 : vector<32xf32> to vector<32x1xf32>
    %157 = math.log %156 : vector<32x1xf32>
    %158 = vector.broadcast %157 : vector<32x1xf32> to vector<32x128xf32>
    %159 = arith.subf %151, %158 : vector<32x128xf32>
    %c0_59 = arith.constant 0 : index
    %c0_60 = arith.constant 0 : index
    %160 = vector.load %arg13[%c0_59, %c0_60] : memref<32x128xf32, #tpu.memory_space<vmem>>, vector<32x128xf32>
    tpu.vector_store %arg13[%c0_59, %c0_60], %159 {strides = array<i32>} : memref<32x128xf32, #tpu.memory_space<vmem>>, vector<32x128xf32>,
    return
  }
  func.func @transform_0(%arg0: i32) -> (i32, i32) {
    %c0_i32 = arith.constant 0 : i32
    %c0_i32_0 = arith.constant 0 : i32
    %c0_i32_1 = arith.constant 0 : i32
    return %c0_i32, %c0_i32_0 : i32, i32
  }
  func.func @transform_1(%arg0: i32) -> (i32, i32) {
    %c0_i32 = arith.constant 0 : i32
    %c0_i32_0 = arith.constant 0 : i32
    %c0_i32_1 = arith.constant 0 : i32
    return %c0_i32, %c0_i32_0 : i32, i32
  }
  func.func @transform_2(%arg0: i32) -> (i32, i32, i32) {
    %c0_i32 = arith.constant 0 : i32
    %c0_i32_0 = arith.constant 0 : i32
    %c0_i32_1 = arith.constant 0 : i32
    %c0_i32_2 = arith.constant 0 : i32
    return %c0_i32, %c0_i32_0, %c0_i32_1 : i32, i32, i32
  }
  func.func @transform_3(%arg0: i32) -> (i32, i32, i32) {
    %c0_i32 = arith.constant 0 : i32
    %c0_i32_0 = arith.constant 0 : i32
    %c0_i32_1 = arith.constant 0 : i32
    %c0_i32_2 = arith.constant 0 : i32
    return %c0_i32, %c0_i32_0, %c0_i32_1 : i32, i32, i32
  }
  func.func @transform_4(%arg0: i32) -> (i32, i32, i32) {
    %c0_i32 = arith.constant 0 : i32
    %c0_i32_0 = arith.constant 0 : i32
    %c0_i32_1 = arith.constant 0 : i32
    %c0_i32_2 = arith.constant 0 : i32
    return %c0_i32, %c0_i32_0, %c0_i32_1 : i32, i32, i32
  }
  func.func @transform_5(%arg0: i32) -> (i32, i32) {
    %c0_i32 = arith.constant 0 : i32
    %c0_i32_0 = arith.constant 0 : i32
    %c0_i32_1 = arith.constant 0 : i32
    return %c0_i32, %c0_i32_0 : i32, i32
  }
  func.func @transform_6(%arg0: i32) -> (i32, i32) {
    %c0_i32 = arith.constant 0 : i32
    %c0_i32_0 = arith.constant 0 : i32
    %c0_i32_1 = arith.constant 0 : i32
    return %c0_i32, %c0_i32_0 : i32, i32
  }
  func.func @transform_7(%arg0: i32) -> (i32, i32) {
    %c0_i32 = arith.constant 0 : i32
    %c0_i32_0 = arith.constant 0 : i32
    %c0_i32_1 = arith.constant 0 : i32
    return %c0_i32, %c0_i32_0 : i32, i32
  }
  func.func @transform_8(%arg0: i32) -> (i32, i32) {
    %c0_i32 = arith.constant 0 : i32
    %c0_i32_0 = arith.constant 0 : i32
    %c0_i32_1 = arith.constant 0 : i32
    return %c0_i32, %c0_i32_0 : i32, i32
  }
  func.func @transform_9(%arg0: i32) -> (i32, i32) {
    %c0_i32 = arith.constant 0 : i32
    %c0_i32_0 = arith.constant 0 : i32
    %c0_i32_1 = arith.constant 0 : i32
    return %c0_i32, %c0_i32_0 : i32, i32
  }
  func.func @transform_10(%arg0: i32) -> (i32, i32) {
    %c0_i32 = arith.constant 0 : i32
    %c0_i32_0 = arith.constant 0 : i32
    %c0_i32_1 = arith.constant 0 : i32
    return %c0_i32, %c0_i32_0 : i32, i32
  }
  func.func @transform_11(%arg0: i32) -> (i32, i32) {
    %c0_i32 = arith.constant 0 : i32
    %c0_i32_0 = arith.constant 0 : i32
    %c0_i32_1 = arith.constant 0 : i32
    return %c0_i32, %c0_i32_0 : i32, i32
  }
  func.func @transform_12(%arg0: i32) -> (i32, i32) {
    %c0_i32 = arith.constant 0 : i32
    %c0_i32_0 = arith.constant 0 : i32
    %c0_i32_1 = arith.constant 0 : i32
    return %c0_i32, %c0_i32_0 : i32, i32
  }
}

</mosaic_0001>

<bundles_post_ra>
// kernel: tpu_custom_call.1
= control target key start
LH: loop header
LB: loop body
LE: loop exit
PB: predicated region body
PF: predicated region fallthrough
CT: control target
= control target key end

     0   :  { %17 = vsyncpa [#allocation3], 0  ;;  %s2309_s0 = inlined_call_operand.vmem [shape: f32[32,32], index: 0, kind: input, shape index: {}]   ;;  %s2310_s1 = inlined_call_operand.vmem [shape: bf16[128,64], index: 1, kind: input, shape index: {}]   ;;  %s2311_s2 = inlined_call_operand.vmem [shape: f32[4,32,32], index: 2, kind: input, shape index: {}]   ;;  %s2312_s3 = inlined_call_operand.vmem [shape: f32[4,32,32], index: 3, kind: input, shape index: {}]   ;;  %s2313_s4 = inlined_call_operand.hbm [shape: f32[4,1,32], index: 4, kind: input, shape index: {}]   ;;  %s2314_s5 = inlined_call_operand.vmem [shape: f32[128,32], index: 5, kind: input, shape index: {}]   ;;  %s2315_s6 = inlined_call_operand.vmem [shape: f32[1,32], index: 6, kind: input, shape index: {}]   ;;  %s2316_s7 = inlined_call_operand.vmem [shape: f32[128,64], index: 7, kind: input, shape index: {}]   ;;  %s2317_s8 = inlined_call_operand.hbm [shape: f32[32,64], index: 8, kind: input, shape index: {}]   ;;  %s2318_s9 = inlined_call_operand.vmem [shape: f32[1,64], index: 9, kind: input, shape index: {}]   ;;  %s2319_s10 = inlined_call_operand.vmem [shape: f32[64,128], index: 10, kind: input, shape index: {}]   ;;  %s2320_s11 = inlined_call_operand.vmem [shape: f32[1,128], index: 11, kind: input, shape index: {}]   ;;  %s2321_s12 = inlined_call_operand.hbm [shape: f32[32,128], index: 12, kind: output, shape index: {}]  }
   0x1   :  { %18 = vsyncpa [#allocation6], 0 }
   0x2   :  { %19 = vsyncpa [#allocation4], 0  ;;  %s32_s23 = sshll.u32 %s2313_s4, 4  ;;  %s1532_s24 = smov [#allocation2]   ;;  %s33_s23 = int_to_ptr.hbm [resolvable:$true] %s32_s23 }
   0x3   :  { %s34_s25 = sshll.u32 %s1532_s24, 4  ;;  %s51_s28 = sshll.u32 %s2317_s8, 4  ;;  %s35_s25 = int_to_ptr.vmem [resolvable:$true] %s34_s25  ;;  %s52_s28 = int_to_ptr.hbm [resolvable:$true] %s51_s28 }
   0x4   :  { %s1533_s29 = smov 16   ;;  %s1534_s30 = smov 1  }
   0x5   :  { %40 = dma.hbm_to_vmem [thread:$0]  %s33_s23, 64, %s35_s25, [#allocation3], %s1533_s29, %s1533_s29, %s1534_s30  }
   0x6   :  { %s1535_s13 = smov [#allocation5]   ;;  %s1536_s15 = smov 128  }
   0x7   :  { %s53_s14 = sshll.u32 %s1535_s13, 4  ;;  %s1537_s16 = smov 8   ;;  %s54_s14 = int_to_ptr.vmem [resolvable:$true] %s53_s14 }
   0x8   :  { %59 = dma.hbm_to_vmem [thread:$0]  %s52_s28, 512, %s54_s14, [#allocation6], %s1536_s15, %s1536_s15, %s1537_s16  }
   0x9   :  { %1526 = dma.done.wait [#allocation3], 64  }
   0xa   :  { %1527 = vsyncadd [#allocation3], 4294967232 }
   0xb   :  { %1528 = dma.done.wait [#allocation6], 512  }
   0xc   :  { %1529 = vsyncadd [#allocation6], 4294966784  ;;  %v129_v0 = vld [vmem:[%s2312_s3 + $0x18] sm:$0xff]  ;;  %v128_v1 = vld [vmem:[%s2312_s3 + $0x10] sm:$0xff]  ;;  %vm152_vm0 = vcmask 261120   ;;  %v146_v10 = vlaneseq  ;;  %vm231_vm3 = vcmask 523264  }
   0xd   :  { %206 = vmatpush.msra.mxu1 %v129_v0  ;;  %v127_v2 = vld [vmem:[%s2312_s3 + $0x8] sm:$0xff]  ;;  %v126_v3 = vld [vmem:[%s2312_s3] sm:$0xff]  ;;  %v1642_v6 = vld [vmem:[%s2309_s0 + $0x10] sm:$0xff]  ;;  %s1538_s28 = smov 32   ;;  %s1539_s24 = smov 64   ;;  %vm923_vm4 = vcmask 785408  }
   0xe   :  { %v74_v4 = vld [vmem:[%s2309_s0] sm:$0xff]  ;;  %v1635_v5 = vld [vmem:[%s2309_s0 + $0x8] sm:$0xff]  ;;  %v1649_v7 = vld [vmem:[%s2309_s0 + $0x18] sm:$0xff]  ;;  %v1653_v11 = vand.u32 127, %v146_v10  ;;  %s1540_s17 = smov 96   ;;  %s1203_s22 = sshll.u32 %s2321_s12, 4  ;;  %s1204_s22 = int_to_ptr.hbm [resolvable:$true] %s1203_s22 }
   0xf   :  { %207 = vmatpush.msra.mxu1 %v128_v1  ;;  %v1370_v15 = vld [vmem:[%s2310_s1] sm:$0xff]   ;;  %v1401_v18 = vld [vmem:[%s2310_s1 + $0x8] sm:$0xff]   ;;  %v1402_v21 = vld [vmem:[%s2310_s1 + $0x10] sm:$0xff]  }
  0x10   :  { %vm148_vm1 = vcmp.lt.s32.totalorder %v1653_v11, 16  ;;  %v1689_v16 = vunpack.c.l.bf16 %v1370_v15  ;;  %v1701_v17 = vunpack.c.h.bf16 %v1370_v15  ;;  %v1708_v19 = vunpack.c.l.bf16 %v1401_v18  ;;  %v1406_v23 = vld [vmem:[%s2310_s1 + $0x30] sm:$0xff]   ;;  %v113_v24 = vld [vmem:[%s2311_s2 + $0x18] sm:$0xff]  ;;  %v111_v27 = vld [vmem:[%s2311_s2 + $0x8] sm:$0xff] }
  0x11   :  { %208 = vmatpush.msra.mxu1 %v127_v2  ;;  %vm1658_vm2 = vmneg %vm148_vm1  ;;  %v1712_v20 = vunpack.c.h.bf16 %v1401_v18  ;;  %v1719_v22 = vunpack.c.l.bf16 %v1402_v21  ;;  %v1729_v25 = vunpack.c.l.bf16 %v1406_v23  ;;  %v112_v26 = vld [vmem:[%s2311_s2 + $0x10] sm:$0xff]  ;;  %177 = vmatpush.msra.mxu0 %v113_v24  ;;  %v1739_v28 = vunpack.c.h.bf16 %v1402_v21  ;;  %v110_v29 = vld [vmem:[%s2311_s2] sm:$0xff] }
  0x12   :  { %v1747_v30 = vunpack.c.h.bf16 %v1406_v23  ;;  %v1403_v31 = vld [vmem:[%s2310_s1 + $0x18] sm:$0xff]   ;;  %v1404_v37 = vld [vmem:[%s2310_s1 + $0x20] sm:$0xff]   ;;  %v1405_v40 = vld [vmem:[%s2310_s1 + $0x28] sm:$0xff]   ;;  %vm1144_vm5 = vcmp.lt.s32.totalorder %v1653_v11, 4 }
  0x13   :  { %209 = vmatpush.msra.mxu1 %v126_v3  ;;  %178 = vmatpush.msra.mxu0 %v112_v26  ;;  %v1754_v32 = vunpack.c.l.bf16 %v1403_v31  ;;  %v1407_v33 = vld [vmem:[%s2310_s1 + $0x38] sm:$0xff]   ;;  %v1767_v35 = vunpack.c.h.bf16 %v1403_v31  ;;  %v1780_v38 = vunpack.c.l.bf16 %v1404_v37  ;;  %v1786_v39 = vunpack.c.h.bf16 %v1404_v37  ;;  %v116_v50 = vld [vmem:[%s2311_s2 + $0x30] sm:$0xff]  ;;  %v115_v52 = vld [vmem:[%s2311_s2 + $0x28] sm:$0xff] }
  0x14   :  { %1221 = vmatmul.msk.f32.vlgmr.msra.gmra.mxu1 %vm152_vm0, %v74_v4  ;;  %v1763_v34 = vunpack.c.l.bf16 %v1407_v33  ;;  %v1773_v36 = vunpack.c.h.bf16 %v1407_v33  ;;  %v1793_v41 = vunpack.c.l.bf16 %v1405_v40  ;;  %v1797_v42 = vunpack.c.h.bf16 %v1405_v40  ;;  %v117_v48 = vld [vmem:[%s2311_s2 + $0x38] sm:$0xff]  ;;  %v132_v51 = vld [vmem:[%s2312_s3 + $0x30] sm:$0xff]  ;;  %v131_v53 = vld [vmem:[%s2312_s3 + $0x28] sm:$0xff] }
  0x15   :  { %179 = vmatpush.msra.mxu0 %v111_v27  ;;  %v133_v49 = vld [vmem:[%s2312_s3 + $0x38] sm:$0xff]  ;;  %v114_v54 = vld [vmem:[%s2311_s2 + $0x20] sm:$0xff] }
  0x16   :  { %v130_v55 = vld [vmem:[%s2312_s3 + $0x20] sm:$0xff] }
  0x17   :  { %180 = vmatpush.msra.mxu0 %v110_v29  ;;  %v1431_v61 = vld [vmem:[#allocation2] ss:$0 sm:$0xff] }
  0x18   :  { %1217 = vmatmul.msk.f32.vlgmr.msra.gmra.mxu0 %vm152_vm0, %v74_v4 }
  0x19   :  { %421 = vmatpush.msrb.mxu0 %v133_v49 }
  0x1b   :  { %422 = vmatpush.msrb.mxu0 %v132_v51 }
  0x1c   :  { %1222 = vmatmul.msk.f32.gmra.mxu1 %vm152_vm0, %v1635_v5 }
  0x1d   :  { %423 = vmatpush.msrb.mxu0 %v131_v53 }
  0x1f   :  { %424 = vmatpush.msrb.mxu0 %v130_v55 }
  0x20   :  { %1218 = vmatmul.msk.f32.gmra.mxu0 %vm152_vm0, %v1635_v5 }
  0x24   :  { %1223 = vmatmul.msk.f32.gmra.mxu1 %vm152_vm0, %v1642_v6 }
  0x28   :  { %1219 = vmatmul.msk.f32.gmra.mxu0 %vm152_vm0, %v1642_v6 }
  0x2c   :  { %1224 = vmatmul.msk.f32.gmra.mxu1 %vm152_vm0, %v1649_v7 }
  0x30   :  { %1220 = vmatmul.msk.f32.gmra.mxu0 %vm152_vm0, %v1649_v7 }
  0x91   :  { %v211_v8 = vpop.f32.mrf.mxu1 }
  0x95   :  { %v182_v59 = vpop.f32.mrf.mxu0 }
  0x96   :  { %v183_v1 = vadd.f32 %v1431_v61, %v182_v59 }
  0x99   :  { %v214_v9 = vpop.f32.mrf.mxu1 }
  0x9d   :  { %v185_v2 = vpop.f32.mrf.mxu0 }
  0x9e   :  { %v186_v10 = vadd.f32 %v1431_v61, %v185_v2  ;;  %v136_v2 = vld [vmem:[%s2312_s3 + $0x50] sm:$0xff] }
  0xa1   :  { %v217_v12 = vpop.f32.mrf.mxu1 }
  0xa9   :  { %v220_v14 = vpop.f32.mrf.mxu1 }
  0xaa   :  { %1226 = vmatpush.msk.msra.mxu2 %vm1658_vm2, %v220_v14  ;;  %1408 = vmatpush.msk.msra.mxu3 %vm1658_vm2, %v220_v14 }
  0xac   :  { %1228 = vmatpush.msk.msra.mxu2 %vm1658_vm2, %v217_v12  ;;  %1409 = vmatpush.msk.msra.mxu3 %vm1658_vm2, %v217_v12 }
  0xae   :  { %1230 = vmatpush.msk.msra.mxu2 %vm1658_vm2, %v214_v9  ;;  %1410 = vmatpush.msk.msra.mxu3 %vm1658_vm2, %v214_v9 }
  0xb0   :  { %1232 = vmatpush.msk.msra.mxu2 %vm1658_vm2, %v211_v8  ;;  %1411 = vmatpush.msk.msra.mxu3 %vm1658_vm2, %v211_v8 }
  0xb2   :  { %1233 = vmatpush.msk.msra.mxu2 %vm148_vm1, %v220_v14  ;;  %1412 = vmatpush.msk.msra.mxu3 %vm148_vm1, %v220_v14  ;;  %v188_v14 = vpop.f32.mrf.mxu0 }
  0xb3   :  { %v189_v27 = vadd.f32 %v1431_v61, %v188_v14  ;;  %v1432_v14 = vld [vmem:[#allocation2 + $0x1] ss:$0 sm:$0xff] }
  0xb4   :  { %1234 = vmatpush.msk.msra.mxu2 %vm148_vm1, %v217_v12  ;;  %1413 = vmatpush.msk.msra.mxu3 %vm148_vm1, %v217_v12 }
  0xb6   :  { %1235 = vmatpush.msk.msra.mxu2 %vm148_vm1, %v214_v9  ;;  %1414 = vmatpush.msk.msra.mxu3 %vm148_vm1, %v214_v9 }
  0xb8   :  { %1236 = vmatpush.msk.msra.mxu2 %vm148_vm1, %v211_v8  ;;  %1415 = vmatpush.msk.msra.mxu3 %vm148_vm1, %v211_v8 }
  0xb9   :  { %1237 = vmatmul.msk.f32.vlgmr.msra.gmra.mxu2 %vm231_vm3, %v1689_v16  ;;  %1249 = vmatmul.msk.f32.vlgmr.msra.gmra.mxu3 %vm231_vm3, %v1729_v25 }
  0xba   :  { %392 = vmatpush.msrb.mxu3 %v117_v48  ;;  %v191_v33 = vpop.f32.mrf.mxu0 }
  0xbc   :  { %393 = vmatpush.msrb.mxu3 %v116_v50 }
  0xbe   :  { %394 = vmatpush.msrb.mxu3 %v115_v52 }
  0xc0   :  { %395 = vmatpush.msrb.mxu3 %v114_v54 }
  0xc1   :  { %1238 = vmatmul.msk.f32.gmra.mxu2 %vm231_vm3, %v1701_v17  ;;  %1250 = vmatmul.msk.f32.gmra.mxu3 %vm231_vm3, %v1747_v30 }
  0xc9   :  { %1239 = vmatmul.msk.f32.gmra.mxu2 %vm231_vm3, %v1708_v19  ;;  %1251 = vmatmul.msk.f32.gmra.mxu3 %vm231_vm3, %v1763_v34 }
  0xd1   :  { %1240 = vmatmul.msk.f32.gmra.mxu2 %vm231_vm3, %v1712_v20  ;;  %1252 = vmatmul.msk.f32.gmra.mxu3 %vm231_vm3, %v1773_v36 }
  0xd9   :  { %1241 = vmatmul.msk.f32.gmra.mxu2 %vm231_vm3, %v1719_v22 }
  0xe1   :  { %1242 = vmatmul.msk.f32.gmra.mxu2 %vm231_vm3, %v1739_v28 }
  0xe9   :  { %1243 = vmatmul.msk.f32.gmra.mxu2 %vm231_vm3, %v1754_v32 }
  0xf1   :  { %1244 = vmatmul.msk.f32.gmra.mxu2 %vm231_vm3, %v1767_v35 }
  0xf9   :  { %1245 = vmatmul.msk.f32.gmra.mxu2 %vm231_vm3, %v1780_v38 }
 0x101   :  { %1246 = vmatmul.msk.f32.gmra.mxu2 %vm231_vm3, %v1786_v39 }
 0x109   :  { %1247 = vmatmul.msk.f32.gmra.mxu2 %vm231_vm3, %v1793_v41 }
 0x111   :  { %1248 = vmatmul.msk.f32.gmra.mxu2 %vm231_vm3, %v1797_v42 }
 0x13c   :  { %v297_v43 = vpop.f32.mrf.mxu2  ;;  %v333_v60 = vpop.f32.mrf.mxu3 }
 0x144   :  { %v300_v44 = vpop.f32.mrf.mxu2  ;;  %v336_v4 = vpop.f32.mrf.mxu3 }
 0x14c   :  { %v303_v45 = vpop.f32.mrf.mxu2  ;;  %v339_v18 = vpop.f32.mrf.mxu3 }
 0x154   :  { %v306_v46 = vpop.f32.mrf.mxu2 }
 0x15c   :  { %v309_v47 = vpop.f32.mrf.mxu2 }
 0x15d   :  { %v345_v62 = vmax.f32 %v297_v43, %v309_v47  ;;  %v192_v47 = vadd.f32 %v1431_v61, %v191_v33 }
 0x164   :  { %v312_v56 = vpop.f32.mrf.mxu2 }
 0x165   :  { %v346_v6 = vmax.f32 %v300_v44, %v312_v56  ;;  %v342_v44 = vpop.f32.mrf.mxu3 }
 0x16c   :  { %v315_v57 = vpop.f32.mrf.mxu2 }
 0x16d   :  { %v347_v21 = vmax.f32 %v303_v45, %v315_v57 }
 0x174   :  { %v318_v58 = vpop.f32.mrf.mxu2 }
 0x175   :  { %v348_v37 = vmax.f32 %v306_v46, %v318_v58 }
 0x17c   :  { %v321_v63 = vpop.f32.mrf.mxu2 }
 0x17d   :  { %v349_v0 = vmax.f32 %v345_v62, %v321_v63  ;;  %v121_v63 = vld [vmem:[%s2311_s2 + $0x58] sm:$0xff] }
 0x17e   :  { %562 = vmatpush.msra.mxu3 %v121_v63 }
 0x17f   :  { %v353_v3 = vmax.f32 %v349_v0, %v333_v60  ;;  %v137_v0 = vld [vmem:[%s2312_s3 + $0x58] sm:$0xff] }
 0x180   :  { %591 = vmatpush.msra.mxu0 %v137_v0 }
 0x181   :  { %v357_v5 = vadd.f32 %v353_v3, %v183_v1  ;;  %v120_v1 = vld [vmem:[%s2311_s2 + $0x50] sm:$0xff]  ;;  %v119_v3 = vld [vmem:[%s2311_s2 + $0x48] sm:$0xff] }
 0x182   :  { %563 = vmatpush.msra.mxu3 %v120_v1  ;;  %592 = vmatpush.msra.mxu0 %v136_v2 }
 0x183   :  { %v1825_v7 = vmax.f32 %v357_v5, 0.0  ;;  %v118_v5 = vld [vmem:[%s2311_s2 + $0x40] sm:$0xff] }
 0x184   :  { %v324_v8 = vpop.f32.mrf.mxu2  ;;  %564 = vmatpush.msra.mxu3 %v119_v3 }
 0x185   :  { %v350_v9 = vmax.f32 %v346_v6, %v324_v8  ;;  %1253 = vmatmul.msk.f32.vlgmr.msrb.gmra.mxu3 %vm152_vm0, %v1825_v7  ;;  %1257 = vmatmul.msk.f32.vlgmr.msrb.gmra.mxu0 %vm152_vm0, %v1825_v7  ;;  %v134_v6 = vld [vmem:[%s2312_s3 + $0x40] sm:$0xff] }
 0x186   :  { %565 = vmatpush.msra.mxu3 %v118_v5 }
 0x187   :  { %v354_v12 = vmax.f32 %v350_v9, %v336_v4  ;;  %v135_v4 = vld [vmem:[%s2312_s3 + $0x48] sm:$0xff] }
 0x188   :  { %593 = vmatpush.msra.mxu0 %v135_v4 }
 0x189   :  { %v358_v15 = vadd.f32 %v354_v12, %v186_v10 }
 0x18a   :  { %594 = vmatpush.msra.mxu0 %v134_v6 }
 0x18b   :  { %v1831_v23 = vmax.f32 %v358_v15, 0.0 }
 0x18c   :  { %v327_v24 = vpop.f32.mrf.mxu2 }
 0x18d   :  { %v351_v26 = vmax.f32 %v347_v21, %v327_v24  ;;  %1254 = vmatmul.msk.f32.gmra.mxu3 %vm152_vm0, %v1831_v23  ;;  %1258 = vmatmul.msk.f32.gmra.mxu0 %vm152_vm0, %v1831_v23 }
 0x18f   :  { %v355_v29 = vmax.f32 %v351_v26, %v339_v18 }
 0x191   :  { %v359_v31 = vadd.f32 %v355_v29, %v189_v27 }
 0x193   :  { %v1837_v40 = vmax.f32 %v359_v31, 0.0 }
 0x194   :  { %v330_v43 = vpop.f32.mrf.mxu2 }
 0x195   :  { %v352_v45 = vmax.f32 %v348_v37, %v330_v43  ;;  %1255 = vmatmul.msk.f32.gmra.mxu3 %vm152_vm0, %v1837_v40  ;;  %1259 = vmatmul.msk.f32.gmra.mxu0 %vm152_vm0, %v1837_v40 }
 0x197   :  { %v356_v48 = vmax.f32 %v352_v45, %v342_v44 }
 0x199   :  { %v360_v49 = vadd.f32 %v356_v48, %v192_v47 }
 0x19b   :  { %v1843_v50 = vmax.f32 %v360_v49, 0.0 }
 0x19d   :  { %1256 = vmatmul.msk.f32.gmra.mxu3 %vm152_vm0, %v1843_v50  ;;  %1260 = vmatmul.msk.f32.gmra.mxu0 %vm152_vm0, %v1843_v50 }
 0x202   :  { %v426_v46 = vpop.f32.mrf.mxu0 }
 0x208   :  { %v397_v10 = vpop.f32.mrf.mxu3 }
 0x209   :  { %v398_v24 = vadd.f32 %v1432_v14, %v397_v10 }
 0x20a   :  { %v429_v51 = vpop.f32.mrf.mxu0 }
 0x210   :  { %v400_v27 = vpop.f32.mrf.mxu3 }
 0x211   :  { %v401_v45 = vadd.f32 %v1432_v14, %v400_v27 }
 0x212   :  { %v432_v52 = vpop.f32.mrf.mxu0 }
 0x218   :  { %v403_v49 = vpop.f32.mrf.mxu3 }
 0x21a   :  { %v435_v53 = vpop.f32.mrf.mxu0 }
 0x21b   :  { %1262 = vmatpush.msk.msrb.mxu1 %vm1658_vm2, %v435_v53 }
 0x21d   :  { %1264 = vmatpush.msk.msrb.mxu1 %vm1658_vm2, %v432_v52 }
 0x21f   :  { %1266 = vmatpush.msk.msrb.mxu1 %vm1658_vm2, %v429_v51 }
 0x220   :  { %v406_v63 = vpop.f32.mrf.mxu3 }
 0x221   :  { %1268 = vmatpush.msk.msrb.mxu1 %vm1658_vm2, %v426_v46  ;;  %v407_v3 = vadd.f32 %v1432_v14, %v406_v63  ;;  %v140_v63 = vld [vmem:[%s2312_s3 + $0x70] sm:$0xff] }
 0x223   :  { %1269 = vmatpush.msk.msrb.mxu1 %vm148_vm1, %v435_v53 }
 0x225   :  { %1270 = vmatpush.msk.msrb.mxu1 %vm148_vm1, %v432_v52 }
 0x227   :  { %1271 = vmatpush.msk.msrb.mxu1 %vm148_vm1, %v429_v51 }
 0x229   :  { %1272 = vmatpush.msk.msrb.mxu1 %vm148_vm1, %v426_v46 }
 0x22a   :  { %1273 = vmatmul.msk.f32.vlgmr.msrb.gmra.mxu1 %vm231_vm3, %v1689_v16 }
 0x232   :  { %1274 = vmatmul.msk.f32.gmra.mxu1 %vm231_vm3, %v1701_v17 }
 0x23a   :  { %1275 = vmatmul.msk.f32.gmra.mxu1 %vm231_vm3, %v1708_v19 }
 0x242   :  { %1276 = vmatmul.msk.f32.gmra.mxu1 %vm231_vm3, %v1712_v20 }
 0x24a   :  { %1277 = vmatmul.msk.f32.gmra.mxu1 %vm231_vm3, %v1719_v22 }
 0x252   :  { %1278 = vmatmul.msk.f32.gmra.mxu1 %vm231_vm3, %v1739_v28 }
 0x25a   :  { %1279 = vmatmul.msk.f32.gmra.mxu1 %vm231_vm3, %v1754_v32 }
 0x262   :  { %1280 = vmatmul.msk.f32.gmra.mxu1 %vm231_vm3, %v1767_v35 }
 0x26a   :  { %1281 = vmatmul.msk.f32.gmra.mxu1 %vm231_vm3, %v1780_v38 }
 0x272   :  { %1282 = vmatmul.msk.f32.gmra.mxu1 %vm231_vm3, %v1786_v39 }
 0x27a   :  { %1283 = vmatmul.msk.f32.gmra.mxu1 %vm231_vm3, %v1793_v41 }
 0x282   :  { %1284 = vmatmul.msk.f32.gmra.mxu1 %vm231_vm3, %v1797_v42 }
 0x28a   :  { %1285 = vmatmul.msk.f32.gmra.mxu1 %vm231_vm3, %v1729_v25 }
 0x292   :  { %1286 = vmatmul.msk.f32.gmra.mxu1 %vm231_vm3, %v1747_v30 }
 0x29a   :  { %1287 = vmatmul.msk.f32.gmra.mxu1 %vm231_vm3, %v1763_v34 }
 0x2a2   :  { %1288 = vmatmul.msk.f32.gmra.mxu1 %vm231_vm3, %v1773_v36 }
 0x2a7   :  { %v463_v54 = vpop.f32.mrf.mxu1 }
 0x2af   :  { %v466_v55 = vpop.f32.mrf.mxu1 }
 0x2b7   :  { %v469_v56 = vpop.f32.mrf.mxu1 }
 0x2bf   :  { %v472_v57 = vpop.f32.mrf.mxu1 }
 0x2c7   :  { %v475_v58 = vpop.f32.mrf.mxu1 }
 0x2c8   :  { %v511_v15 = vmax.f32 %v463_v54, %v475_v58 }
 0x2cf   :  { %v478_v59 = vpop.f32.mrf.mxu1 }
 0x2d0   :  { %v512_v31 = vmax.f32 %v466_v55, %v478_v59  ;;  %v404_v55 = vadd.f32 %v1432_v14, %v403_v49  ;;  %v122_v49 = vld [vmem:[%s2311_s2 + $0x60] sm:$0xff] }
 0x2d7   :  { %v481_v60 = vpop.f32.mrf.mxu1 }
 0x2d8   :  { %v513_v46 = vmax.f32 %v469_v56, %v481_v60 }
 0x2df   :  { %v484_v61 = vpop.f32.mrf.mxu1 }
 0x2e0   :  { %v514_v56 = vmax.f32 %v472_v57, %v484_v61 }
 0x2e7   :  { %v487_v62 = vpop.f32.mrf.mxu1 }
 0x2e8   :  { %v515_v18 = vmax.f32 %v511_v15, %v487_v62 }
 0x2ef   :  { %v490_v8 = vpop.f32.mrf.mxu1 }
 0x2f0   :  { %v516_v37 = vmax.f32 %v512_v31, %v490_v8 }
 0x2f7   :  { %v493_v9 = vpop.f32.mrf.mxu1 }
 0x2f8   :  { %v517_v52 = vmax.f32 %v513_v46, %v493_v9 }
 0x2ff   :  { %v496_v12 = vpop.f32.mrf.mxu1 }
 0x300   :  { %v518_v0 = vmax.f32 %v514_v56, %v496_v12 }
 0x307   :  { %v499_v21 = vpop.f32.mrf.mxu1 }
 0x308   :  { %v519_v26 = vmax.f32 %v515_v18, %v499_v21 }
 0x30a   :  { %v523_v29 = vadd.f32 %v519_v26, %v398_v24 }
 0x30c   :  { %v527_v33 = vmax.f32 %v523_v29, 0.0 }
 0x30e   :  { %v1922_v43 = vadd.f32 %v527_v33, %v1825_v7 }
 0x30f   :  { %v502_v44 = vpop.f32.mrf.mxu1 }
 0x310   :  { %v520_v47 = vmax.f32 %v516_v37, %v502_v44  ;;  %1289 = vmatmul.msk.f32.vlgmr.msra.gmra.mxu3 %vm152_vm0, %v1922_v43  ;;  %1293 = vmatmul.msk.f32.vlgmr.msra.gmra.mxu0 %vm152_vm0, %v1922_v43 }
 0x312   :  { %v524_v48 = vadd.f32 %v520_v47, %v401_v45  ;;  %v125_v45 = vld [vmem:[%s2311_s2 + $0x78] sm:$0xff]  ;;  %v124_v47 = vld [vmem:[%s2311_s2 + $0x70] sm:$0xff] }
 0x313   :  { %732 = vmatpush.msrb.mxu0 %v125_v45 }
 0x314   :  { %v528_v51 = vmax.f32 %v524_v48, 0.0  ;;  %v123_v48 = vld [vmem:[%s2311_s2 + $0x68] sm:$0xff] }
 0x315   :  { %733 = vmatpush.msrb.mxu0 %v124_v47 }
 0x316   :  { %v1929_v53 = vadd.f32 %v528_v51, %v1831_v23 }
 0x317   :  { %v505_v54 = vpop.f32.mrf.mxu1  ;;  %734 = vmatpush.msrb.mxu0 %v123_v48 }
 0x318   :  { %v521_v58 = vmax.f32 %v517_v52, %v505_v54  ;;  %1290 = vmatmul.msk.f32.gmra.mxu3 %vm152_vm0, %v1929_v53  ;;  %1294 = vmatmul.msk.f32.gmra.mxu0 %vm152_vm0, %v1929_v53  ;;  %v1426_v59 = vpack.i.bf16 %v1929_v53, %v1922_v43  ;;  %v1433_v54 = vld [vmem:[#allocation2 + $0x2] ss:$0 sm:$0xff] }
 0x319   :  { %735 = vmatpush.msrb.mxu0 %v122_v49 }
 0x31a   :  { %v525_v62 = vadd.f32 %v521_v58, %v404_v55  ;;  %1427 = vrot.lane.b32.xlu0 %v1426_v59, %s1538_s28 }
 0x31c   :  { %v529_v60 = vmax.f32 %v525_v62, 0.0 }
 0x31e   :  { %v1939_v1 = vadd.f32 %v529_v60, %v1837_v40  ;;  %v141_v60 = vld [vmem:[%s2312_s3 + $0x78] sm:$0xff] }
 0x31f   :  { %v508_v2 = vpop.f32.mrf.mxu1  ;;  %761 = vmatpush.msra.mxu0 %v141_v60 }
 0x320   :  { %v522_v4 = vmax.f32 %v518_v0, %v508_v2  ;;  %1291 = vmatmul.msk.f32.gmra.mxu3 %vm152_vm0, %v1939_v1  ;;  %1295 = vmatmul.msk.f32.gmra.mxu0 %vm152_vm0, %v1939_v1  ;;  %v139_v2 = vld [vmem:[%s2312_s3 + $0x68] sm:$0xff] }
 0x321   :  { %762 = vmatpush.msra.mxu0 %v140_v63  ;;  %v942_v63 = vld [vmem:[%s2314_s5 + $0x70] sm:$0xff] }
 0x322   :  { %v526_v5 = vadd.f32 %v522_v4, %v407_v3 }
 0x323   :  { %763 = vmatpush.msra.mxu0 %v139_v2  ;;  %v941_v2 = vld [vmem:[%s2314_s5 + $0x68] sm:$0xff] }
 0x324   :  { %v530_v6 = vmax.f32 %v526_v5, 0.0  ;;  %v138_v5 = vld [vmem:[%s2312_s3 + $0x60] sm:$0xff] }
 0x325   :  { %764 = vmatpush.msra.mxu0 %v138_v5  ;;  %v940_v5 = vld [vmem:[%s2314_s5 + $0x60] sm:$0xff] }
 0x326   :  { %v1946_v8 = vadd.f32 %v530_v6, %v1843_v50 }
 0x328   :  { %1292 = vmatmul.msk.f32.gmra.mxu3 %vm152_vm0, %v1946_v8  ;;  %1296 = vmatmul.msk.f32.gmra.mxu0 %vm152_vm0, %v1946_v8 }
 0x38d   :  { %v596_v57 = vpop.f32.mrf.mxu0 }
 0x393   :  { %v567_v12 = vpop.f32.mrf.mxu3 }
 0x394   :  { %v568_v62 = vadd.f32 %v1433_v54, %v567_v12 }
 0x395   :  { %v599_v61 = vpop.f32.mrf.mxu0 }
 0x39b   :  { %v570_v14 = vpop.f32.mrf.mxu3 }
 0x39d   :  { %v602_v9 = vpop.f32.mrf.mxu0 }
 0x3a3   :  { %v573_v15 = vpop.f32.mrf.mxu3 }
 0x3a5   :  { %v605_v10 = vpop.f32.mrf.mxu0 }
 0x3a6   :  { %1298 = vmatpush.msk.msrb.mxu3 %vm1658_vm2, %v605_v10 }
 0x3a8   :  { %1300 = vmatpush.msk.msrb.mxu3 %vm1658_vm2, %v602_v9 }
 0x3aa   :  { %1302 = vmatpush.msk.msrb.mxu3 %vm1658_vm2, %v599_v61 }
 0x3ab   :  { %v576_v18 = vpop.f32.mrf.mxu3 }
 0x3ac   :  { %1304 = vmatpush.msk.msrb.mxu3 %vm1658_vm2, %v596_v57 }
 0x3ae   :  { %1305 = vmatpush.msk.msrb.mxu3 %vm148_vm1, %v605_v10 }
 0x3b0   :  { %1306 = vmatpush.msk.msrb.mxu3 %vm148_vm1, %v602_v9  ;;  %v571_v9 = vadd.f32 %v1433_v54, %v570_v14 }
 0x3b2   :  { %1307 = vmatpush.msk.msrb.mxu3 %vm148_vm1, %v599_v61 }
 0x3b4   :  { %1308 = vmatpush.msk.msrb.mxu3 %vm148_vm1, %v596_v57 }
 0x3b5   :  { %1309 = vmatmul.msk.f32.vlgmr.msrb.gmra.mxu3 %vm231_vm3, %v1689_v16 }
 0x3bd   :  { %1310 = vmatmul.msk.f32.gmra.mxu3 %vm231_vm3, %v1701_v17 }
 0x3c5   :  { %1311 = vmatmul.msk.f32.gmra.mxu3 %vm231_vm3, %v1708_v19 }
 0x3cd   :  { %1312 = vmatmul.msk.f32.gmra.mxu3 %vm231_vm3, %v1712_v20 }
 0x3d5   :  { %1313 = vmatmul.msk.f32.gmra.mxu3 %vm231_vm3, %v1719_v22 }
 0x3dd   :  { %1314 = vmatmul.msk.f32.gmra.mxu3 %vm231_vm3, %v1739_v28 }
 0x3e5   :  { %1315 = vmatmul.msk.f32.gmra.mxu3 %vm231_vm3, %v1754_v32 }
 0x3ed   :  { %1316 = vmatmul.msk.f32.gmra.mxu3 %vm231_vm3, %v1767_v35 }
 0x3f5   :  { %1317 = vmatmul.msk.f32.gmra.mxu3 %vm231_vm3, %v1780_v38 }
 0x3fd   :  { %1318 = vmatmul.msk.f32.gmra.mxu3 %vm231_vm3, %v1786_v39 }
 0x405   :  { %1319 = vmatmul.msk.f32.gmra.mxu3 %vm231_vm3, %v1793_v41 }
 0x40d   :  { %1320 = vmatmul.msk.f32.gmra.mxu3 %vm231_vm3, %v1797_v42 }
 0x415   :  { %1321 = vmatmul.msk.f32.gmra.mxu3 %vm231_vm3, %v1729_v25 }
 0x41d   :  { %1322 = vmatmul.msk.f32.gmra.mxu3 %vm231_vm3, %v1747_v30 }
 0x425   :  { %1323 = vmatmul.msk.f32.gmra.mxu3 %vm231_vm3, %v1763_v34 }
 0x42d   :  { %1324 = vmatmul.msk.f32.gmra.mxu3 %vm231_vm3, %v1773_v36 }
 0x438   :  { %v633_v21 = vpop.f32.mrf.mxu3 }
 0x440   :  { %v636_v24 = vpop.f32.mrf.mxu3 }
 0x448   :  { %v639_v26 = vpop.f32.mrf.mxu3 }
 0x450   :  { %v642_v27 = vpop.f32.mrf.mxu3 }
 0x458   :  { %v645_v29 = vpop.f32.mrf.mxu3 }
 0x459   :  { %v681_v55 = vmax.f32 %v633_v21, %v645_v29 }
 0x460   :  { %v648_v31 = vpop.f32.mrf.mxu3 }
 0x461   :  { %v682_v3 = vmax.f32 %v636_v24, %v648_v31 }
 0x468   :  { %v651_v33 = vpop.f32.mrf.mxu3 }
 0x469   :  { %v683_v21 = vmax.f32 %v639_v26, %v651_v33  ;;  %v577_v26 = vadd.f32 %v1433_v54, %v576_v18 }
 0x470   :  { %v654_v37 = vpop.f32.mrf.mxu3 }
 0x471   :  { %v684_v47 = vmax.f32 %v642_v27, %v654_v37 }
 0x478   :  { %v657_v44 = vpop.f32.mrf.mxu3 }
 0x479   :  { %v685_v58 = vmax.f32 %v681_v55, %v657_v44  ;;  %v574_v44 = vadd.f32 %v1433_v54, %v573_v15 }
 0x480   :  { %v660_v46 = vpop.f32.mrf.mxu3 }
 0x481   :  { %v686_v6 = vmax.f32 %v682_v3, %v660_v46 }
 0x488   :  { %v663_v51 = vpop.f32.mrf.mxu3 }
 0x489   :  { %v687_v29 = vmax.f32 %v683_v21, %v663_v51 }
 0x490   :  { %v666_v52 = vpop.f32.mrf.mxu3 }
 0x491   :  { %v688_v49 = vmax.f32 %v684_v47, %v666_v52 }
 0x498   :  { %v669_v59 = vpop.f32.mrf.mxu3 }
 0x499   :  { %v689_v56 = vmax.f32 %v685_v58, %v669_v59 }
 0x49b   :  { %v693_v0 = vadd.f32 %v689_v56, %v568_v62 }
 0x49d   :  { %v697_v4 = vmax.f32 %v693_v0, 0.0 }
 0x49f   :  { %v2025_v57 = vadd.f32 %v697_v4, %v1922_v43 }
 0x4a0   :  { %v672_v61 = vpop.f32.mrf.mxu3 }
 0x4a1   :  { %v690_v10 = vmax.f32 %v686_v6, %v672_v61  ;;  %887 = vrot.lane.b32.xlu0 %v2025_v57, %s1539_s24  ;;  %1325 = vmatmul.msk.f32.vlgmr.msrb.gmra.mxu0 %vm152_vm0, %v2025_v57 }
 0x4a3   :  { %v694_v12 = vadd.f32 %v690_v10, %v571_v9  ;;  %v939_v9 = vld [vmem:[%s2314_s5 + $0x58] sm:$0xff] }
 0x4a5   :  { %v698_v24 = vmax.f32 %v694_v12, 0.0 }
 0x4a7   :  { %v2032_v31 = vadd.f32 %v698_v24, %v1929_v53  ;;  %v938_v24 = vld [vmem:[%s2314_s5 + $0x50] sm:$0xff] }
 0x4a8   :  { %v675_v43 = vpop.f32.mrf.mxu3 }
 0x4a9   :  { %v691_v45 = vmax.f32 %v687_v29, %v675_v43  ;;  %1326 = vmatmul.msk.f32.gmra.mxu0 %vm152_vm0, %v2032_v31 }
 0x4ab   :  { %v695_v14 = vadd.f32 %v691_v45, %v574_v44 }
 0x4ad   :  { %v699_v48 = vmax.f32 %v695_v14, 0.0 }
 0x4af   :  { %v2037_v46 = vadd.f32 %v699_v48, %v1939_v1 }
 0x4b0   :  { %v678_v55 = vpop.f32.mrf.mxu3 }
 0x4b1   :  { %v692_v33 = vmax.f32 %v688_v49, %v678_v55  ;;  %891 = vrot.lane.b32.xlu0 %v2037_v46, %s1539_s24  ;;  %1327 = vmatmul.msk.f32.gmra.mxu0 %vm152_vm0, %v2037_v46 }
 0x4b3   :  { %v696_v53 = vadd.f32 %v692_v33, %v577_v26 }
 0x4b5   :  { %v700_v15 = vmax.f32 %v696_v53, 0.0 }
 0x4b7   :  { %v2044_v51 = vadd.f32 %v700_v15, %v1946_v8 }
 0x4b9   :  { %893 = vrot.lane.b32.xlu0 %v2044_v51, %s1539_s24  ;;  %1328 = vmatmul.msk.f32.gmra.mxu0 %vm152_vm0, %v2044_v51 }
 0x4c1   :  { %1329 = vmatmul.msk.f32.vlgmr.msra.gmra.mxu0 %vm152_vm0, %v2025_v57 }
 0x4c9   :  { %1330 = vmatmul.msk.f32.gmra.mxu0 %vm152_vm0, %v2032_v31 }
 0x4d1   :  { %1331 = vmatmul.msk.f32.gmra.mxu0 %vm152_vm0, %v2037_v46 }
 0x4d9   :  { %1332 = vmatmul.msk.f32.gmra.mxu0 %vm152_vm0, %v2044_v51 }
 0x51e   :  { %v737_v18 = vpop.f32.mrf.mxu0 }
 0x526   :  { %v2058_v27 = vpop.f32.mrf.mxu0 }
 0x52e   :  { %v2060_v37 = vpop.f32.mrf.mxu0 }
 0x536   :  { %v2062_v52 = vpop.f32.mrf.mxu0 }
 0x53e   :  { %v766_v54 = vpop.f32.mrf.mxu0 }
 0x546   :  { %v769_v58 = vpop.f32.mrf.mxu0 }
 0x54e   :  { %v772_v59 = vpop.f32.mrf.mxu0 }
 0x556   :  { %v775_v62 = vpop.f32.mrf.mxu0 }
 0x557   :  { %1334 = vmatpush.msk.msrb.mxu2 %vm1658_vm2, %v775_v62 }
 0x559   :  { %1336 = vmatpush.msk.msrb.mxu2 %vm1658_vm2, %v772_v59 }
 0x55b   :  { %1338 = vmatpush.msk.msrb.mxu2 %vm1658_vm2, %v769_v58 }
 0x55d   :  { %1340 = vmatpush.msk.msrb.mxu2 %vm1658_vm2, %v766_v54 }
 0x55f   :  { %1341 = vmatpush.msk.msrb.mxu2 %vm148_vm1, %v775_v62  ;;  %v930_v62 = vld [vmem:[%s2314_s5 + $0x10] sm:$0xff] }
 0x561   :  { %1342 = vmatpush.msk.msrb.mxu2 %vm148_vm1, %v772_v59 }
 0x563   :  { %1343 = vmatpush.msk.msrb.mxu2 %vm148_vm1, %v769_v58 }
 0x565   :  { %1344 = vmatpush.msk.msrb.mxu2 %vm148_vm1, %v766_v54 }
 0x566   :  { %1345 = vmatmul.msk.f32.vlgmr.msrb.gmra.mxu2 %vm231_vm3, %v1689_v16 }
 0x56e   :  { %1346 = vmatmul.msk.f32.gmra.mxu2 %vm231_vm3, %v1701_v17 }
 0x576   :  { %1347 = vmatmul.msk.f32.gmra.mxu2 %vm231_vm3, %v1708_v19 }
 0x57e   :  { %1348 = vmatmul.msk.f32.gmra.mxu2 %vm231_vm3, %v1712_v20 }
 0x586   :  { %1349 = vmatmul.msk.f32.gmra.mxu2 %vm231_vm3, %v1719_v22 }
 0x58e   :  { %1350 = vmatmul.msk.f32.gmra.mxu2 %vm231_vm3, %v1739_v28 }
 0x596   :  { %1351 = vmatmul.msk.f32.gmra.mxu2 %vm231_vm3, %v1754_v32 }
 0x59e   :  { %1352 = vmatmul.msk.f32.gmra.mxu2 %vm231_vm3, %v1767_v35 }
 0x5a6   :  { %1353 = vmatmul.msk.f32.gmra.mxu2 %vm231_vm3, %v1780_v38 }
 0x5ae   :  { %1354 = vmatmul.msk.f32.gmra.mxu2 %vm231_vm3, %v1786_v39 }
 0x5b6   :  { %1355 = vmatmul.msk.f32.gmra.mxu2 %vm231_vm3, %v1793_v41  ;;  %v1434_v41 = vld [vmem:[#allocation2 + $0x3] ss:$0 sm:$0xff] }
 0x5b7   :  { %v741_v12 = vadd.f32 %v1434_v41, %v2058_v27  ;;  %v744_v48 = vadd.f32 %v1434_v41, %v2060_v37  ;;  %v747_v27 = vadd.f32 %v1434_v41, %v2062_v52  ;;  %v931_v52 = vld [vmem:[%s2314_s5 + $0x18] sm:$0xff] }
 0x5be   :  { %1356 = vmatmul.msk.f32.gmra.mxu2 %vm231_vm3, %v1797_v42 }
 0x5c6   :  { %1357 = vmatmul.msk.f32.gmra.mxu2 %vm231_vm3, %v1729_v25 }
 0x5ce   :  { %1358 = vmatmul.msk.f32.gmra.mxu2 %vm231_vm3, %v1747_v30 }
 0x5d6   :  { %1359 = vmatmul.msk.f32.gmra.mxu2 %vm231_vm3, %v1763_v34  ;;  %v738_v34 = vadd.f32 %v1434_v41, %v737_v18  ;;  %v1428_v41 = vpop.permute.xlu0 %1427 }
 0x5de   :  { %1360 = vmatmul.msk.f32.gmra.mxu2 %vm231_vm3, %v1773_v36  ;;  %v943_v36 = vld [vmem:[%s2314_s5 + $0x78] sm:$0xff] }
 0x5df   :  { %948 = vmatpush.msrb.mxu0 %v943_v36  ;;  %v888_v36 = vpop.permute.xlu0 %887 }
 0x5e1   :  { %949 = vmatpush.msrb.mxu0 %v942_v63  ;;  %v998_v63 = vld [vmem:[%s2316_s7 + $0x8] sm:$0xff] }
 0x5e3   :  { %950 = vmatpush.msrb.mxu0 %v941_v2 }
 0x5e5   :  { %951 = vmatpush.msrb.mxu0 %v940_v5  ;;  %v997_v5 = vld [vmem:[%s2316_s7] sm:$0xff] }
 0x5e7   :  { %952 = vmatpush.msrb.mxu0 %v939_v9 }
 0x5e9   :  { %v803_v13 = vpop.f32.mrf.mxu2  ;;  %953 = vmatpush.msrb.mxu0 %v938_v24  ;;  %v892_v24 = vpop.permute.xlu0 %891 }
 0x5f1   :  { %v806_v16 = vpop.f32.mrf.mxu2 }
 0x5f9   :  { %v809_v17 = vpop.f32.mrf.mxu2 }
 0x601   :  { %v812_v19 = vpop.f32.mrf.mxu2 }
 0x609   :  { %v815_v20 = vpop.f32.mrf.mxu2 }
 0x60a   :  { %v851_v30 = vmax.f32 %v803_v13, %v815_v20  ;;  %v929_v13 = vld [vmem:[%s2314_s5 + $0x8] sm:$0xff] }
 0x60b   :  { %v1010_v20 = vld [vmem:[%s2316_s7 + $0x68] sm:$0xff] }
 0x611   :  { %v818_v22 = vpop.f32.mrf.mxu2 }
 0x612   :  { %v852_v3 = vmax.f32 %v806_v16, %v818_v22  ;;  %v928_v16 = vld [vmem:[%s2314_s5] sm:$0xff] }
 0x613   :  { %v1009_v22 = vld [vmem:[%s2316_s7 + $0x60] sm:$0xff] }
 0x619   :  { %v821_v28 = vpop.f32.mrf.mxu2 }
 0x61a   :  { %v853_v43 = vmax.f32 %v809_v17, %v821_v28  ;;  %v1012_v17 = vld [vmem:[%s2316_s7 + $0x78] sm:$0xff] }
 0x61b   :  { %v1008_v28 = vld [vmem:[%s2316_s7 + $0x58] sm:$0xff] }
 0x621   :  { %v824_v32 = vpop.f32.mrf.mxu2 }
 0x622   :  { %v854_v26 = vmax.f32 %v812_v19, %v824_v32  ;;  %v1011_v19 = vld [vmem:[%s2316_s7 + $0x70] sm:$0xff] }
 0x623   :  { %v1007_v32 = vld [vmem:[%s2316_s7 + $0x50] sm:$0xff] }
 0x629   :  { %v827_v35 = vpop.f32.mrf.mxu2 }
 0x62a   :  { %v855_v42 = vmax.f32 %v851_v30, %v827_v35  ;;  %v1006_v35 = vld [vmem:[%s2316_s7 + $0x48] sm:$0xff] }
 0x62b   :  { %v1002_v30 = vld [vmem:[%s2316_s7 + $0x28] sm:$0xff] }
 0x631   :  { %v830_v38 = vpop.f32.mrf.mxu2 }
 0x632   :  { %v856_v6 = vmax.f32 %v852_v3, %v830_v38  ;;  %v1005_v38 = vld [vmem:[%s2316_s7 + $0x40] sm:$0xff] }
 0x639   :  { %v833_v25 = vpop.f32.mrf.mxu2 }
 0x63a   :  { %v857_v45 = vmax.f32 %v853_v43, %v833_v25  ;;  %v1004_v25 = vld [vmem:[%s2316_s7 + $0x38] sm:$0xff] }
 0x641   :  { %v836_v39 = vpop.f32.mrf.mxu2 }
 0x642   :  { %v858_v53 = vmax.f32 %v854_v26, %v836_v39  ;;  %v1003_v39 = vld [vmem:[%s2316_s7 + $0x30] sm:$0xff] }
 0x643   :  { %v1014_v26 = vld [vmem:[#allocation5 + $0x8] sm:$0xff] }
 0x649   :  { %v839_v56 = vpop.f32.mrf.mxu2 }
 0x64a   :  { %v859_v60 = vmax.f32 %v855_v42, %v839_v56  ;;  %v1001_v42 = vld [vmem:[%s2316_s7 + $0x20] sm:$0xff]  ;;  %v1429_v56 = vunpack.i.l.bf16 %v1428_v41 }
 0x64c   :  { %v863_v0 = vadd.f32 %v859_v60, %v738_v34  ;;  %v1000_v34 = vld [vmem:[%s2316_s7 + $0x18] sm:$0xff]  ;;  %v999_v60 = vld [vmem:[%s2316_s7 + $0x10] sm:$0xff]  ;;  %v915_v2 = vsel %vm152_vm0, %v1825_v7, %v1429_v56 }
 0x64d   :  { %v919_v3 = vsel %vm231_vm3, %v915_v2, %v888_v36  ;;  %v1094_v56 = vld [vmem:[%s2319_s10 + $0x18] sm:$0xff]  ;;  %v1091_v36 = vld [vmem:[%s2319_s10] sm:$0xff] }
 0x64e   :  { %v867_v4 = vmax.f32 %v863_v0, 0.0 }
 0x650   :  { %v871_v61 = vadd.f32 %v867_v4, %v2025_v57  ;;  %v937_v57 = vld [vmem:[%s2314_s5 + $0x48] sm:$0xff] }
 0x651   :  { %v842_v10 = vpop.f32.mrf.mxu2  ;;  %954 = vmatpush.msrb.mxu0 %v937_v57 }
 0x652   :  { %v860_v21 = vmax.f32 %v856_v6, %v842_v10  ;;  %903 = vrot.lane.b32.xlu1 %v871_v61, %s1540_s17  ;;  %v1430_v61 = vunpack.i.h.bf16 %v1428_v41 }
 0x654   :  { %v864_v29 = vadd.f32 %v860_v21, %v741_v12  ;;  %v916_v10 = vsel %vm152_vm0, %v1831_v23, %v1430_v61 }
 0x656   :  { %v868_v44 = vmax.f32 %v864_v29, 0.0 }
 0x658   :  { %v872_v14 = vadd.f32 %v868_v44, %v2032_v31 }
 0x659   :  { %v845_v47 = vpop.f32.mrf.mxu2 }
 0x65a   :  { %v861_v49 = vmax.f32 %v857_v45, %v845_v47  ;;  %905 = vrot.lane.b32.xlu2 %v872_v14, %s1540_s17  ;;  %889 = vrot.lane.b32.xlu1 %v2032_v31, %s1539_s24  ;;  %v936_v31 = vld [vmem:[%s2314_s5 + $0x40] sm:$0xff]  ;;  %v894_v14 = vpop.permute.xlu0 %893 }
 0x65b   :  { %955 = vmatpush.msrb.mxu0 %v936_v31 }
 0x65c   :  { %v865_v55 = vadd.f32 %v861_v49, %v744_v48 }
 0x65e   :  { %v869_v33 = vmax.f32 %v865_v55, 0.0  ;;  %v1016_v55 = vld [vmem:[#allocation5 + $0x18] sm:$0xff] }
 0x65f   :  { %1033 = vmatpush.msra.mxu1 %v1016_v55 }
 0x660   :  { %v873_v15 = vadd.f32 %v869_v33, %v2037_v46  ;;  %v935_v46 = vld [vmem:[%s2314_s5 + $0x38] sm:$0xff]  ;;  %v1013_v33 = vld [vmem:[#allocation5] sm:$0xff] }
 0x661   :  { %v848_v18 = vpop.f32.mrf.mxu2  ;;  %956 = vmatpush.msrb.mxu0 %v935_v46 }
 0x662   :  { %v862_v54 = vmax.f32 %v858_v53, %v848_v18  ;;  %879 = vrot.lane.b32.xlu2 %v1939_v1, %s1538_s28  ;;  %907 = vrot.lane.b32.xlu1 %v873_v15, %s1540_s17  ;;  %v934_v1 = vld [vmem:[%s2314_s5 + $0x30] sm:$0xff]  ;;  %v1435_v53 = vld [vmem:[%s2315_s6] ss:$0 sm:$0xff] }
 0x663   :  { %957 = vmatpush.msrb.mxu0 %v934_v1 }
 0x664   :  { %v866_v37 = vadd.f32 %v862_v54, %v747_v27 }
 0x666   :  { %v870_v58 = vmax.f32 %v866_v37, 0.0 }
 0x668   :  { %v874_v59 = vadd.f32 %v870_v58, %v2044_v51  ;;  %v932_v51 = vld [vmem:[%s2314_s5 + $0x20] sm:$0xff] }
 0x66a   :  { %881 = vrot.lane.b32.xlu2 %v1946_v8, %s1538_s28  ;;  %909 = vrot.lane.b32.xlu1 %v874_v59, %s1540_s17  ;;  %v933_v8 = vld [vmem:[%s2314_s5 + $0x28] sm:$0xff] }
 0x66b   :  { %958 = vmatpush.msrb.mxu0 %v933_v8 }
 0x66d   :  { %959 = vmatpush.msrb.mxu0 %v932_v51 }
 0x66f   :  { %960 = vmatpush.msrb.mxu0 %v931_v52 }
 0x671   :  { %961 = vmatpush.msrb.mxu0 %v930_v62 }
 0x673   :  { %962 = vmatpush.msrb.mxu0 %v929_v13 }
 0x675   :  { %963 = vmatpush.msrb.mxu0 %v928_v16  ;;  %v1098_v16 = vld [vmem:[%s2319_s10 + $0x38] sm:$0xff] }
 0x677   :  { %1050 = vmatpush.msra.mxu0 %v1012_v17  ;;  %v1097_v17 = vld [vmem:[%s2319_s10 + $0x30] sm:$0xff] }
 0x679   :  { %1051 = vmatpush.msra.mxu0 %v1011_v19 }
 0x67b   :  { %1052 = vmatpush.msra.mxu0 %v1010_v20  ;;  %v1096_v20 = vld [vmem:[%s2319_s10 + $0x28] sm:$0xff] }
 0x67d   :  { %1053 = vmatpush.msra.mxu0 %v1009_v22 }
 0x67f   :  { %1054 = vmatpush.msra.mxu0 %v1008_v28 }
 0x681   :  { %1055 = vmatpush.msra.mxu0 %v1007_v32 }
 0x683   :  { %1056 = vmatpush.msra.mxu0 %v1006_v35  ;;  %v1095_v35 = vld [vmem:[%s2319_s10 + $0x20] sm:$0xff] }
 0x685   :  { %1057 = vmatpush.msra.mxu0 %v1005_v38 }
 0x687   :  { %1058 = vmatpush.msra.mxu0 %v1004_v25 }
 0x689   :  { %1059 = vmatpush.msra.mxu0 %v1003_v39 }
 0x68b   :  { %1060 = vmatpush.msra.mxu0 %v1002_v30 }
 0x68d   :  { %1061 = vmatpush.msra.mxu0 %v1001_v42 }
 0x68f   :  { %1062 = vmatpush.msra.mxu0 %v1000_v34  ;;  %v1093_v34 = vld [vmem:[%s2319_s10 + $0x10] sm:$0xff] }
 0x691   :  { %1063 = vmatpush.msra.mxu0 %v999_v60  ;;  %v1092_v60 = vld [vmem:[%s2319_s10 + $0x8] sm:$0xff] }
 0x693   :  { %1064 = vmatpush.msra.mxu0 %v998_v63 }
 0x695   :  { %1065 = vmatpush.msra.mxu0 %v997_v5 }
 0x6b4   :  { %v906_v0 = vpop.permute.xlu2 %905 }
 0x6bc   :  { %v880_v9 = vpop.permute.xlu2 %879 }
 0x6bd   :  { %v917_v29 = vsel %vm152_vm0, %v1837_v40, %v880_v9  ;;  %v1015_v40 = vld [vmem:[#allocation5 + $0x10] sm:$0xff] }
 0x6be   :  { %v921_v43 = vsel %vm231_vm3, %v917_v29, %v892_v24  ;;  %1034 = vmatpush.msra.mxu1 %v1015_v40 }
 0x6c0   :  { %1035 = vmatpush.msra.mxu1 %v1014_v26 }
 0x6c2   :  { %1036 = vmatpush.msra.mxu1 %v1013_v33 }
 0x6c4   :  { %v904_v4 = vpop.permute.xlu1 %903  ;;  %v882_v45 = vpop.permute.xlu2 %881  ;;  %1123 = vmatpush.msrb.mxu1 %v1098_v16 }
 0x6c5   :  { %v924_v6 = vsel %vm923_vm4, %v919_v3, %v904_v4  ;;  %v918_v23 = vsel %vm152_vm0, %v1843_v50, %v882_v45 }
 0x6c6   :  { %964 = vmatmul.f32.vlgmr.msrb.gmra.mxu0 %v924_v6  ;;  %v922_v48 = vsel %vm231_vm3, %v918_v23, %v894_v14  ;;  %1124 = vmatpush.msrb.mxu1 %v1097_v17 }
 0x6c8   :  { %1125 = vmatpush.msrb.mxu1 %v1096_v20 }
 0x6ca   :  { %1126 = vmatpush.msrb.mxu1 %v1095_v35 }
 0x6cc   :  { %v890_v12 = vpop.permute.xlu1 %889  ;;  %1127 = vmatpush.msrb.mxu1 %v1094_v56 }
 0x6cd   :  { %v920_v7 = vsel %vm231_vm3, %v916_v10, %v890_v12 }
 0x6ce   :  { %v925_v21 = vsel %vm923_vm4, %v920_v7, %v906_v0  ;;  %1128 = vmatpush.msrb.mxu1 %v1093_v34  ;;  %v1436_v0 = vld [vmem:[%s2318_s9] ss:$0 sm:$0xff] }
 0x6cf   :  { %967 = vmatmul.f32.gmra.mxu0 %v925_v21 }
 0x6d0   :  { %1129 = vmatpush.msrb.mxu1 %v1092_v60 }
 0x6d2   :  { %1130 = vmatpush.msrb.mxu1 %v1091_v36 }
 0x6d4   :  { %v908_v57 = vpop.permute.xlu1 %907 }
 0x6d5   :  { %v926_v44 = vsel %vm923_vm4, %v921_v43, %v908_v57 }
 0x6d7   :  { %970 = vmatmul.f32.gmra.mxu0 %v926_v44 }
 0x6dc   :  { %v910_v47 = vpop.permute.xlu1 %909 }
 0x6dd   :  { %v927_v49 = vsel %vm923_vm4, %v922_v48, %v910_v47  ;;  %v1437_v47 = vld [vmem:[%s2320_s11] ss:$0 sm:$0xff]  ;;  %s1541_s11 = smov [#allocation7]  }
 0x6de   :  { %s1201_s20 = sshll.u32 %s1541_s11, 4  ;;  %s1202_s20 = int_to_ptr.vmem [resolvable:$true] %s1201_s20 }
 0x6df   :  { %973 = vmatmul.f32.gmra.mxu0 %v927_v49 }
 0x6e7   :  { %1066 = vmatmul.f32.vlgmr.msra.gmra.mxu0 %v924_v6 }
 0x6ef   :  { %1069 = vmatmul.f32.gmra.mxu0 %v925_v21 }
 0x6f7   :  { %1072 = vmatmul.f32.gmra.mxu0 %v926_v44 }
 0x6ff   :  { %1075 = vmatmul.f32.gmra.mxu0 %v927_v49 }
 0x743   :  { %v965_v50 = vpop.f32.mrf.mxu0 }
 0x744   :  { %v966_v15 = vadd.f32 %v1435_v53, %v965_v50 }
 0x746   :  { %v977_v54 = vsel %vm152_vm0, %v966_v15, -inf }
 0x74c   :  { %v968_v18 = vpop.f32.mrf.mxu0 }
 0x74d   :  { %v969_v27 = vadd.f32 %v1435_v53, %v968_v18 }
 0x74f   :  { %v978_v37 = vsel %vm152_vm0, %v969_v27, -inf }
 0x750   :  { %v979_v58 = vmax.f32 %v977_v54, %v978_v37 }
 0x752   :  { %v980_v59 = vrot.slane %v979_v58, 4 }
 0x754   :  { %v981_v31 = vmax.f32 %v979_v58, %v980_v59  ;;  %v971_v46 = vpop.f32.mrf.mxu0 }
 0x755   :  { %v972_v52 = vadd.f32 %v1435_v53, %v971_v46 }
 0x756   :  { %v982_v1 = vrot.slane %v981_v31, 2 }
 0x757   :  { %v986_v22 = vsel %vm152_vm0, %v972_v52, -inf }
 0x758   :  { %v983_v8 = vmax.f32 %v981_v31, %v982_v1 }
 0x75a   :  { %v984_v51 = vrot.slane %v983_v8, 1 }
 0x75c   :  { %v985_v62 = vmax.f32 %v983_v8, %v984_v51  ;;  %v974_v13 = vpop.f32.mrf.mxu0 }
 0x75d   :  { %v975_v19 = vadd.f32 %v1435_v53, %v974_v13 }
 0x75e   :  { %1361 = vmatmul.msk.f32.vlgmr.msra.gmra.mxu1 %vm152_vm0, %v985_v62 }
 0x75f   :  { %v987_v28 = vsel %vm152_vm0, %v975_v19, -inf }
 0x760   :  { %v988_v32 = vmax.f32 %v986_v22, %v987_v28 }
 0x762   :  { %v989_v38 = vrot.slane %v988_v32, 4 }
 0x764   :  { %v990_v25 = vmax.f32 %v988_v32, %v989_v38  ;;  %v1067_v63 = vpop.f32.mrf.mxu0 }
 0x766   :  { %v991_v39 = vrot.slane %v990_v25, 2  ;;  %1362 = vmatmul.msk.f32.gmra.mxu1 %vm152_vm0, %v985_v62 }
 0x768   :  { %v992_v41 = vmax.f32 %v990_v25, %v991_v39 }
 0x76a   :  { %v993_v30 = vrot.slane %v992_v41, 1 }
 0x76c   :  { %v994_v42 = vmax.f32 %v992_v41, %v993_v30  ;;  %v1070_v5 = vpop.f32.mrf.mxu0 }
 0x76e   :  { %1363 = vmatmul.msk.f32.gmra.mxu1 %vm152_vm0, %v994_v42 }
 0x774   :  { %v1073_v7 = vpop.f32.mrf.mxu0 }
 0x776   :  { %1364 = vmatmul.msk.f32.gmra.mxu1 %vm152_vm0, %v994_v42 }
 0x77c   :  { %v1076_v43 = vpop.f32.mrf.mxu0 }
 0x7db   :  { %v1038_v2 = vpop.f32.mrf.mxu1 }
 0x7dc   :  { %v1068_v3 = vadd.f32 %v1067_v63, %v1038_v2 }
 0x7de   :  { %v1083_v4 = vadd.f32 %v1436_v0, %v1068_v3 }
 0x7e0   :  { %v1087_v6 = vmax.f32 %v1083_v4, 0.0 }
 0x7e2   :  { %1365 = vmatmul.msk.f32.vlgmr.msrb.gmra.mxu1 %vm231_vm3, %v1087_v6 }
 0x7e3   :  { %v1041_v61 = vpop.f32.mrf.mxu1 }
 0x7e4   :  { %v1071_v9 = vadd.f32 %v1070_v5, %v1041_v61 }
 0x7e6   :  { %v1084_v10 = vadd.f32 %v1436_v0, %v1071_v9 }
 0x7e8   :  { %v1088_v12 = vmax.f32 %v1084_v10, 0.0 }
 0x7ea   :  { %1366 = vmatmul.msk.f32.gmra.mxu1 %vm231_vm3, %v1088_v12 }
 0x7eb   :  { %v1044_v21 = vpop.f32.mrf.mxu1 }
 0x7ec   :  { %v1074_v24 = vadd.f32 %v1073_v7, %v1044_v21 }
 0x7ee   :  { %v1085_v29 = vadd.f32 %v1436_v0, %v1074_v24 }
 0x7f0   :  { %v1089_v57 = vmax.f32 %v1085_v29, 0.0 }
 0x7f2   :  { %1367 = vmatmul.msk.f32.gmra.mxu1 %vm231_vm3, %v1089_v57 }
 0x7f3   :  { %v1047_v44 = vpop.f32.mrf.mxu1 }
 0x7f4   :  { %v1077_v45 = vadd.f32 %v1076_v43, %v1047_v44 }
 0x7f6   :  { %v1086_v23 = vadd.f32 %v1436_v0, %v1077_v45 }
 0x7f8   :  { %v1090_v14 = vmax.f32 %v1086_v23, 0.0 }
 0x7fa   :  { %1368 = vmatmul.msk.f32.gmra.mxu1 %vm231_vm3, %v1090_v14 }
 0x85f   :  { %v1132_v48 = vpop.f32.mrf.mxu1 }
 0x860   :  { %v1133_v49 = vadd.f32 %v1437_v47, %v1132_v48 }
 0x862   :  { %v1145_v55 = vsel %vm1144_vm5, %v1133_v49, -1e+30 }
 0x863   :  { %1149 = vmax.xlane.f32.xlu2 %v1145_v55 }
 0x867   :  { %v1135_v40 = vpop.f32.mrf.mxu1 }
 0x868   :  { %v1136_v26 = vadd.f32 %v1437_v47, %v1135_v40 }
 0x86a   :  { %v1146_v33 = vsel %vm1144_vm5, %v1136_v26, -1e+30 }
 0x86b   :  { %1151 = vmax.xlane.f32.xlu0 %v1146_v33 }
 0x86f   :  { %v1138_v50 = vpop.f32.mrf.mxu1 }
 0x870   :  { %v1139_v53 = vadd.f32 %v1437_v47, %v1138_v50 }
 0x872   :  { %v1147_v15 = vsel %vm1144_vm5, %v1139_v53, -1e+30 }
 0x873   :  { %1153 = vmax.xlane.f32.xlu1 %v1147_v15 }
 0x877   :  { %v1141_v18 = vpop.f32.mrf.mxu1 }
 0x878   :  { %v1142_v27 = vadd.f32 %v1437_v47, %v1141_v18 }
 0x87a   :  { %v1148_v54 = vsel %vm1144_vm5, %v1142_v27, -1e+30 }
 0x87b   :  { %1155 = vmax.xlane.f32.xlu2 %v1148_v54 }
 0x8d6   :  { %v1150_v37 = vpop.xlane.xlu2 %1149 }
 0x8d7   :  { %v1157_v58 = vsub.f32 %v1145_v55, %v1150_v37 }
 0x8d9   :  { %v1161_v59 = vmul.f32 1.442695, %v1157_v58 }
 0x8db   :  { %1438 = vpow2.f32 %v1161_v59 }
 0x8de   :  { %v1152_v31 = vpop.xlane.xlu0 %1151 }
 0x8df   :  { %v1158_v46 = vsub.f32 %v1146_v33, %v1152_v31 }
 0x8e1   :  { %v1439_v1 = vpop.eup %1438  ;;  %v1163_v8 = vmul.f32 1.442695, %v1158_v46 }
 0x8e2   :  { %v1169_v51 = vsel %vm1144_vm5, %v1439_v1, 0.0 }
 0x8e3   :  { %1440 = vpow2.f32 %v1163_v8  ;;  %1173 = vadd.xlane.f32.xlu2 %v1169_v51 }
 0x8e6   :  { %v1154_v52 = vpop.xlane.xlu1 %1153 }
 0x8e7   :  { %v1159_v62 = vsub.f32 %v1147_v15, %v1154_v52 }
 0x8e9   :  { %v1441_v13 = vpop.eup %1440  ;;  %v1165_v16 = vmul.f32 1.442695, %v1159_v62 }
 0x8ea   :  { %v1170_v17 = vsel %vm1144_vm5, %v1441_v13, 0.0 }
 0x8eb   :  { %1442 = vpow2.f32 %v1165_v16  ;;  %1175 = vadd.xlane.f32.xlu0 %v1170_v17 }
 0x8ee   :  { %v1156_v19 = vpop.xlane.xlu2 %1155 }
 0x8ef   :  { %v1160_v20 = vsub.f32 %v1148_v54, %v1156_v19 }
 0x8f1   :  { %v1443_v22 = vpop.eup %1442  ;;  %v1167_v28 = vmul.f32 1.442695, %v1160_v20 }
 0x8f2   :  { %v1171_v32 = vsel %vm1144_vm5, %v1443_v22, 0.0 }
 0x8f3   :  { %1444 = vpow2.f32 %v1167_v28  ;;  %1177 = vadd.xlane.f32.xlu1 %v1171_v32 }
 0x8f9   :  { %v1445_v35 = vpop.eup %1444 }
 0x8fa   :  { %v1172_v38 = vsel %vm1144_vm5, %v1445_v35, 0.0 }
 0x8fb   :  { %1179 = vadd.xlane.f32.xlu2 %v1172_v38 }
 0x956   :  { %v1174_v25 = vpop.xlane.xlu2 %1173 }
 0x957   :  { %1446 = vlog2.f32 %v1174_v25 }
 0x95d   :  { %v1447_v39 = vpop.eup %1446 }
 0x95e   :  { %v1182_v41 = vmul.f32 0.6931472, %v1447_v39  ;;  %v1176_v30 = vpop.xlane.xlu0 %1175 }
 0x95f   :  { %1448 = vlog2.f32 %v1176_v30 }
 0x960   :  { %v1189_v42 = vsub.f32 %v1157_v58, %v1182_v41 }
 0x962   :  { %1193 = vst [vmem:[#allocation7] sm:$0xff] %v1189_v42 }
 0x965   :  { %v1449_v56 = vpop.eup %1448 }
 0x966   :  { %v1184_v34 = vmul.f32 0.6931472, %v1449_v56  ;;  %v1178_v60 = vpop.xlane.xlu1 %1177 }
 0x967   :  { %1450 = vlog2.f32 %v1178_v60 }
 0x968   :  { %v1190_v36 = vsub.f32 %v1158_v46, %v1184_v34 }
 0x96a   :  { %1194 = vst [vmem:[#allocation7 + $0x8] sm:$0xff] %v1190_v36 }
 0x96d   :  { %v1451_v63 = vpop.eup %1450 }
 0x96e   :  { %v1186_v0 = vmul.f32 0.6931472, %v1451_v63  ;;  %v1180_v2 = vpop.xlane.xlu2 %1179 }
 0x96f   :  { %1452 = vlog2.f32 %v1180_v2 }
 0x970   :  { %v1191_v11 = vsub.f32 %v1159_v62, %v1186_v0 }
 0x972   :  { %1195 = vst [vmem:[#allocation7 + $0x10] sm:$0xff] %v1191_v11 }
 0x975   :  { %v1453_v3 = vpop.eup %1452 }
 0x976   :  { %v1188_v4 = vmul.f32 0.6931472, %v1453_v3 }
 0x978   :  { %v1192_v5 = vsub.f32 %v1160_v20, %v1188_v4 }
 0x97a   :  { %1196 = vst [vmem:[#allocation7 + $0x18] sm:$0xff] %v1192_v5 }
 0x97b   :  { %1209 = dma.vmem_to_hbm [thread:$0]  %s1202_s20, 512, %s1204_s22, [#allocation4], %s1536_s15, %s1536_s15, %s1537_s16  }
 0x97c   :  { %1530 = dma.done.wait [#allocation4], 512  }
 0x97d   :  { %1531 = vsyncadd [#allocation4], 4294966784 }
 0x97e   :  { %1214 = vsyncpa [#allocation3], 1 }
 0x97f   :  { %1215 = vsyncpa [#allocation6], 1 }
 0x980   :  { %1216 = vsyncpa [#allocation4], 1 }

</bundles_post_ra>
